<compile_context>
chip_gen: v6e
topology: v6e:2x2x1
jax: 0.10.0
libtpu: 0.0.40
codegen_flags: <defaults>
</compile_context>

<pallas_src>
import functools

import jax
import jax.numpy as jnp
from jax.experimental import pallas as pl
from jax.experimental.pallas import tpu as pltpu

LN_EPS = 1e-5  # torch.nn.LayerNorm default


def _duration_predictor_kernel(x_ref, halo_ref, w1_ref, w2_ref, pv_ref, bl_ref,
                               out_ref, *, seq_len):
    f32 = jnp.float32
    bf16 = jnp.bfloat16
    tm = x_ref.shape[0]
    T = seq_len

    pv = pv_ref[...]                                   # [8, F] f32 (single DMA)
    b1, ga1, bb1 = pv[0:1], pv[1:2], pv[2:3]
    b2, ga2, bb2 = pv[3:4], pv[4:5], pv[5:6]
    wl = pv[6:7]
    bl = bl_ref[0, 0]                                  # scalar Linear bias (SMEM)

    def layer_norm(h, g, b):
        mu = jnp.mean(h, axis=-1, keepdims=True)
        var = jnp.mean((h - mu) ** 2, axis=-1, keepdims=True)
        return (h - mu) * jax.lax.rsqrt(var + LN_EPS) * g + b

    # conv1 is evaluated for tm+2 "extended" rows (one recomputed overlap row on
    # each side of the tile) so conv2's +-1 taps exist locally in this step.
    # Tap assembly is done in f32 (cheap converts; avoids packed-dtype sublane
    # shifts) and cast to bf16 only for the MXU operands.
    xt = x_ref[...].astype(f32)                        # global rows [i*tm, i*tm+tm)
    hl = halo_ref[0].astype(f32)                       # rows [i*tm-4,i*tm) + [i*tm+tm, i*tm+tm+4)
    window = jnp.concatenate([hl[2:4], xt, hl[4:6]], axis=0)   # rows [i*tm-2, i*tm+tm+2)

    x_prev = window[0:tm + 2].astype(bf16)             # row g-1 for extended centers g
    x_cent = window[1:tm + 3].astype(bf16)             # row g
    x_next = window[2:tm + 4].astype(bf16)             # row g+1

    # Batch-edge tap masks from the global row index (t = row mod T).
    base = pl.program_id(0) * tm
    r1 = jax.lax.broadcasted_iota(jnp.int32, (tm + 2, 1), 0)
    t1 = jnp.remainder(base + (T - 1) + r1, T)         # == (base - 1 + r1) mod T, kept >= 0
    mp1 = (t1 != 0).astype(f32)
    mn1 = (t1 != T - 1).astype(f32)

    # ---- Conv1d(k=3, p=1) #1: three accumulated K=Cin matmuls -> LN -> ReLU ----
    a1 = jnp.dot(x_prev, w1_ref[0], preferred_element_type=f32) * mp1
    a1 = a1 + jnp.dot(x_cent, w1_ref[1], preferred_element_type=f32)
    a1 = a1 + jnp.dot(x_next, w1_ref[2], preferred_element_type=f32) * mn1
    a1 = a1 + b1
    h = jnp.maximum(layer_norm(a1, ga1, bb1), 0.0)     # (tm+2, F) f32

    r2 = jax.lax.broadcasted_iota(jnp.int32, (tm, 1), 0)
    t2 = jnp.remainder(base + r2, T)
    mp2 = (t2 != 0).astype(f32)
    mn2 = (t2 != T - 1).astype(f32)

    # ---- Conv1d #2: three accumulated K=F matmuls over shifted h rows ----
    a2 = jnp.dot(h[0:tm].astype(bf16), w2_ref[0], preferred_element_type=f32) * mp2
    a2 = a2 + jnp.dot(h[1:tm + 1].astype(bf16), w2_ref[1], preferred_element_type=f32)
    a2 = a2 + jnp.dot(h[2:tm + 2].astype(bf16), w2_ref[2], preferred_element_type=f32) * mn2
    a2 = a2 + b2
    h2 = jnp.maximum(layer_norm(a2, ga2, bb2), 0.0)    # (tm, F) f32

    # ---- Linear(F -> 1) + ReLU: broadcast-multiply + lane reduction (XLU) ----
    z = jnp.maximum(jnp.sum(h2 * wl, axis=-1) + bl, 0.0)          # (tm,)
    out_ref[0, :] = z.astype(out_ref.dtype)


def duration_predictor_forward(x, params, tm=256):
    """x: [B, T, C_in] float32. Returns [1, B, T] (eval-mode module output)."""
    B, T, Cin = x.shape
    K, _, F = params["w1"].shape
    assert K == 3, "kernel specialised for duration_predictor_kernel_size=3"

    BT = B * T
    # Row-tile size: multiple of 128 (lane-dense stores, MXU-friendly M), no
    # larger than the padded row count.  Tuning guidance: ~256 on v5e,
    # 512-1024 on v6e, <=512/core on v7x (the "parallel" axis uses both TCs).
    tm = max(128, (tm // 128) * 128)
    tm = min(tm, pl.cdiv(BT, 128) * 128)
    M_pad = pl.cdiv(BT, tm) * tm
    n_tiles = M_pad // tm

    x_flat = x.reshape(BT, Cin).astype(jnp.float32)
    x_main = jnp.pad(x_flat, ((0, M_pad - BT), (0, 0))).astype(jnp.bfloat16)

    # Per-tile halo rows: 4 before tile start + 4 after tile end (only +-2 are
    # consumed; 8 keeps the little block sublane-shaped).  Lets every grid step
    # recompute its one-row h overlap locally -> no cross-tile state.
    xpad = jnp.pad(x_flat, ((4, M_pad - BT + 4), (0, 0)))        # rows [4, 4+BT) = data
    offs = jnp.concatenate([jnp.arange(4), tm + 4 + jnp.arange(4)])
    idx = (jnp.arange(n_tiles)[:, None] * tm + offs[None, :]).reshape(-1)
    halo = jnp.take(xpad, idx, axis=0).reshape(n_tiles, 8, Cin).astype(jnp.bfloat16)

    # bf16 matmul operands (MXU-native; halves HBM/VMEM for x and weights).
    w1b = params["w1"].astype(jnp.bfloat16)                      # [3, Cin, F]
    w2b = params["w2"].astype(jnp.bfloat16)                      # [3, F, F]

    # Pack the 7 per-channel f32 vectors into a single [8, F] operand (1 DMA).
    pv = jnp.concatenate([params["b1"], params["g1"], params["be1"],
                          params["b2"], params["g2"], params["be2"],
                          params["wl"], jnp.zeros((1, F), jnp.float32)], axis=0)
    bl = params["bl"].reshape(1, 1).astype(jnp.float32)          # SMEM scalar

    kernel = functools.partial(_duration_predictor_kernel, seq_len=T)
    out = pl.pallas_call(
        kernel,
        out_shape=jax.ShapeDtypeStruct((1, M_pad), jnp.float32),
        grid_spec=pltpu.PrefetchScalarGridSpec(
            num_scalar_prefetch=0,
            grid=(n_tiles,),
            in_specs=[
                pl.BlockSpec((tm, Cin), lambda i: (i, 0)),          # x row tile
                pl.BlockSpec((1, 8, Cin), lambda i: (i, 0, 0)),     # halo rows
                pl.BlockSpec((3, Cin, F), lambda i: (0, 0, 0)),     # conv1 weights (resident)
                pl.BlockSpec((3, F, F), lambda i: (0, 0, 0)),       # conv2 weights (resident)
                pl.BlockSpec((8, F), lambda i: (0, 0)),             # packed per-channel vectors
                pl.BlockSpec(memory_space=pltpu.MemorySpace.SMEM),  # linear bias scalar
            ],
            out_specs=pl.BlockSpec((1, tm), lambda i: (0, i)),      # lane-dense slab
        ),
        compiler_params=pltpu.CompilerParams(
            dimension_semantics=("parallel",)),
    )(x_main, halo, w1b, w2b, pv, bl)

    # torch: out.squeeze() -> [B, T]; eval-mode unsqueeze(0) -> [1, B, T]
    return out[0, :BT].reshape(B, T)[None, :, :]


def _reference_forward(x, params, matmul_dtype=jnp.float32):
    """Pure-JAX reference (same math as the torch module, eval mode).

    matmul_dtype=bfloat16 mirrors the kernel's MXU operand precision exactly
    (f32 accumulation and f32 LayerNorm either way)."""
    def dot(a, w):
        return jnp.dot(a.astype(matmul_dtype), w.astype(matmul_dtype),
                       preferred_element_type=jnp.float32)

    def conv(inp, w_taps, bias):
        L = inp.shape[0]
        xp = jnp.pad(inp, ((1, 1), (0, 0)))
        return (dot(xp[0:L], w_taps[0]) + dot(xp[1:L + 1], w_taps[1])
                + dot(xp[2:L + 2], w_taps[2]) + bias)

    def ln(inp, g, b):
        m = jnp.mean(inp, -1, keepdims=True)
        v = jnp.mean((inp - m) ** 2, -1, keepdims=True)
        return (inp - m) / jnp.sqrt(v + LN_EPS) * g + b

    def one(xb):
        h = jnp.maximum(ln(conv(xb, params["w1"], params["b1"]),
                           params["g1"], params["be1"]), 0.0)
        h = jnp.maximum(ln(conv(h, params["w2"], params["b2"]),
                           params["g2"], params["be2"]), 0.0)
        z = jnp.sum(h * params["wl"], -1) + params["bl"][0, 0]
        return jnp.maximum(z, 0.0)

    return jax.vmap(one)(x)[None]


if __name__ == "__main__":
    # Small deterministic config (model_config analog):
    #   encoder_dim = 32, duration_predictor_filter_size = 32,
    #   duration_predictor_kernel_size = 3, dropout irrelevant (eval mode).
    B, T, Cin, F, K = 2, 8, 32, 32, 3

    key = jax.random.PRNGKey(0)
    keys = jax.random.split(key, 8)

    x = jax.random.normal(keys[0], (B, T, Cin), dtype=jnp.float32)

    # Conv weights stored as [K, C_in, C_out] (torch weight [Cout, Cin, K]
    # transposed so each tap is a [Cin, Cout] matmul operand).
    params = {
        "w1": 0.1 * jax.random.normal(keys[1], (K, Cin, F), jnp.float32),
        "b1": 0.01 * jax.random.normal(keys[2], (1, F), jnp.float32),
        "g1": jnp.ones((1, F), jnp.float32),
        "be1": jnp.zeros((1, F), jnp.float32),
        "w2": 0.1 * jax.random.normal(keys[3], (K, F, F), jnp.float32),
        "b2": 0.01 * jax.random.normal(keys[4], (1, F), jnp.float32),
        "g2": jnp.ones((1, F), jnp.float32),
        "be2": jnp.zeros((1, F), jnp.float32),
        "wl": 0.1 * jax.random.normal(keys[5], (1, F), jnp.float32),
        "bl": 0.01 * jax.random.normal(keys[6], (1, 1), jnp.float32),
    }

    # --- Test 1: tiny config (single row tile) ---
    out = jax.block_until_ready(duration_predictor_forward(x, params))
    ref_bf16 = _reference_forward(x, params, matmul_dtype=jnp.bfloat16)
    ref_f32 = _reference_forward(x, params, matmul_dtype=jnp.float32)
    assert out.shape == (1, B, T), out.shape
    assert jnp.allclose(out, ref_bf16, atol=2e-3, rtol=2e-3), "mismatch vs bf16-matched reference"
    assert jnp.allclose(out, ref_f32, atol=5e-2, rtol=5e-2), "mismatch vs f32 reference"

    # --- Test 2: multiple row tiles with a tile boundary inside a batch,
    #             exercising the halo-row recompute path ---
    B2, T2 = 3, 100
    x2 = jax.random.normal(keys[7], (B2, T2, Cin), dtype=jnp.float32)
    out2 = jax.block_until_ready(duration_predictor_forward(x2, params, tm=256))
    ref2 = _reference_forward(x2, params, matmul_dtype=jnp.bfloat16)
    assert out2.shape == (1, B2, T2), out2.shape
    assert jnp.allclose(out2, ref2, atol=2e-3, rtol=2e-3), "mismatch vs reference (tiled)"

    print("KERNEL_OK")
</pallas_src>

<mosaic_0001>
module attributes {stable_mosaic.version = 11 : i64} {
  func.func @_duration_predictor_kernel(%arg0: i32, %arg1: memref<128x32xbf16, #tpu.memory_space<vmem>>, %arg2: memref<1x8x32xbf16, #tpu.memory_space<vmem>>, %arg3: memref<3x32x32xbf16, #tpu.memory_space<vmem>>, %arg4: memref<3x32x32xbf16, #tpu.memory_space<vmem>>, %arg5: memref<8x32xf32, #tpu.memory_space<vmem>>, %arg6: memref<1x1xf32, #tpu.memory_space<smem>>, %arg7: memref<1x128xf32, #tpu.memory_space<vmem>>) attributes {dimension_semantics = [#tpu.dimension_semantics<parallel>], iteration_bounds = array<i64: 1>, scalar_prefetch = 0 : i64, scratch_operands = 0 : i64, tpu.core_type = #tpu.core_type<tc>, window_params = [{transform_indices = @transform_0, window_bounds = array<i64: 128, 32>}, {transform_indices = @transform_1, window_bounds = array<i64: 1, 8, 32>}, {pipeline_mode = #tpu.pipeline_mode<synchronous>, transform_indices = @transform_2, window_bounds = array<i64: 3, 32, 32>}, {pipeline_mode = #tpu.pipeline_mode<synchronous>, transform_indices = @transform_3, window_bounds = array<i64: 3, 32, 32>}, {pipeline_mode = #tpu.pipeline_mode<synchronous>, transform_indices = @transform_4, window_bounds = array<i64: 8, 32>}, {transform_indices = @transform_5, window_bounds = array<i64: 1, 1>}, {transform_indices = @transform_6, window_bounds = array<i64: 1, 128>}]} {
    %c0 = arith.constant 0 : index
    %c0_0 = arith.constant 0 : index
    %0 = vector.load %arg5[%c0, %c0_0] : memref<8x32xf32, #tpu.memory_space<vmem>>, vector<8x32xf32>
    %1 = vector.extract_strided_slice %0 {offsets = [0, 0], sizes = [1, 32], strides = [1, 1]} : vector<8x32xf32> to vector<1x32xf32>
    %2 = vector.extract_strided_slice %0 {offsets = [1, 0], sizes = [1, 32], strides = [1, 1]} : vector<8x32xf32> to vector<1x32xf32>
    %3 = vector.extract_strided_slice %0 {offsets = [2, 0], sizes = [1, 32], strides = [1, 1]} : vector<8x32xf32> to vector<1x32xf32>
    %4 = vector.extract_strided_slice %0 {offsets = [3, 0], sizes = [1, 32], strides = [1, 1]} : vector<8x32xf32> to vector<1x32xf32>
    %5 = vector.extract_strided_slice %0 {offsets = [4, 0], sizes = [1, 32], strides = [1, 1]} : vector<8x32xf32> to vector<1x32xf32>
    %6 = vector.extract_strided_slice %0 {offsets = [5, 0], sizes = [1, 32], strides = [1, 1]} : vector<8x32xf32> to vector<1x32xf32>
    %7 = vector.extract_strided_slice %0 {offsets = [6, 0], sizes = [1, 32], strides = [1, 1]} : vector<8x32xf32> to vector<1x32xf32>
    %c0_1 = arith.constant 0 : index
    %c0_2 = arith.constant 0 : index
    %8 = memref.load %arg6[%c0_1, %c0_2] : memref<1x1xf32, #tpu.memory_space<smem>>
    %c0_3 = arith.constant 0 : index
    %c0_4 = arith.constant 0 : index
    %9 = vector.load %arg1[%c0_3, %c0_4] : memref<128x32xbf16, #tpu.memory_space<vmem>>, vector<128x32xbf16>
    %10 = arith.extf %9 : vector<128x32xbf16> to vector<128x32xf32>
    %c0_5 = arith.constant 0 : index
    %c0_6 = arith.constant 0 : index
    %c0_7 = arith.constant 0 : index
    %11 = vector.load %arg2[%c0_5, %c0_6, %c0_7] : memref<1x8x32xbf16, #tpu.memory_space<vmem>>, vector<1x8x32xbf16>
    %12 = vector.shape_cast %11 : vector<1x8x32xbf16> to vector<8x32xbf16>
    %13 = arith.extf %12 : vector<8x32xbf16> to vector<8x32xf32>
    %14 = vector.extract_strided_slice %13 {offsets = [2, 0], sizes = [2, 32], strides = [1, 1]} : vector<8x32xf32> to vector<2x32xf32>
    %15 = vector.extract_strided_slice %13 {offsets = [4, 0], sizes = [2, 32], strides = [1, 1]} : vector<8x32xf32> to vector<2x32xf32>
    %16 = tpu.concatenate %14, %10, %15 in 0 : vector<2x32xf32>, vector<128x32xf32>, vector<2x32xf32> -> vector<132x32xf32>
    %17 = vector.extract_strided_slice %16 {offsets = [0, 0], sizes = [130, 32], strides = [1, 1]} : vector<132x32xf32> to vector<130x32xf32>
    %18 = arith.truncf %17 : vector<130x32xf32> to vector<130x32xbf16>
    %19 = vector.extract_strided_slice %16 {offsets = [1, 0], sizes = [130, 32], strides = [1, 1]} : vector<132x32xf32> to vector<130x32xf32>
    %20 = arith.truncf %19 : vector<130x32xf32> to vector<130x32xbf16>
    %21 = vector.extract_strided_slice %16 {offsets = [2, 0], sizes = [130, 32], strides = [1, 1]} : vector<132x32xf32> to vector<130x32xf32>
    %22 = arith.truncf %21 : vector<130x32xf32> to vector<130x32xbf16>
    %c128_i32 = arith.constant 128 : i32
    %23 = arith.muli %arg0, %c128_i32 : i32
    %24 = tpu.iota {dimensions = array<i32: 0>} : vector<130x1xi32>
    %c7_i32 = arith.constant 7 : i32
    %25 = arith.addi %23, %c7_i32 : i32
    %26 = vector.broadcast %25 : i32 to vector<130x1xi32>
    %27 = arith.addi %26, %24 : vector<130x1xi32>
    %c8_i32 = arith.constant 8 : i32
    %c0_i32 = arith.constant 0 : i32
    %28 = arith.cmpi eq, %c8_i32, %c0_i32 : i32
    %c1_i32 = arith.constant 1 : i32
    %29 = arith.select %28, %c1_i32, %c8_i32 : i32
    %30 = vector.broadcast %29 : i32 to vector<130x1xi32>
    %31 = arith.remsi %27, %30 : vector<130x1xi32>
    %c0_i32_8 = arith.constant 0 : i32
    %32 = vector.broadcast %c0_i32_8 : i32 to vector<130x1xi32>
    %33 = arith.cmpi ne, %31, %32 : vector<130x1xi32>
    %c0_i32_9 = arith.constant 0 : i32
    %34 = vector.broadcast %c0_i32_9 : i32 to vector<130x1xi32>
    %35 = arith.cmpi slt, %31, %34 : vector<130x1xi32>
    %c0_i32_10 = arith.constant 0 : i32
    %36 = arith.cmpi slt, %29, %c0_i32_10 : i32
    %37 = vector.broadcast %36 : i1 to vector<130x1xi1>
    %38 = vector.broadcast %37 : vector<130x1xi1> to vector<130x1xi1>
    %39 = arith.xori %35, %38 : vector<130x1xi1>
    %40 = arith.andi %39, %33 : vector<130x1xi1>
    %41 = vector.broadcast %29 : i32 to vector<130x1xi32>
    %42 = arith.addi %31, %41 : vector<130x1xi32>
    %43 = arith.select %40, %42, %31 : vector<130x1xi1>, vector<130x1xi32>
    %c0_i32_11 = arith.constant 0 : i32
    %44 = vector.broadcast %c0_i32_11 : i32 to vector<130x1xi32>
    %45 = arith.cmpi ne, %43, %44 : vector<130x1xi32>
    %46 = arith.extui %45 : vector<130x1xi1> to vector<130x1xi32>
    %47 = arith.sitofp %46 : vector<130x1xi32> to vector<130x1xf32>
    %c7_i32_12 = arith.constant 7 : i32
    %48 = vector.broadcast %c7_i32_12 : i32 to vector<130x1xi32>
    %49 = arith.cmpi ne, %43, %48 : vector<130x1xi32>
    %50 = arith.extui %49 : vector<130x1xi1> to vector<130x1xi32>
    %51 = arith.sitofp %50 : vector<130x1xi32> to vector<130x1xf32>
    %c0_13 = arith.constant 0 : index
    %c0_14 = arith.constant 0 : index
    %c0_15 = arith.constant 0 : index
    %52 = vector.load %arg3[%c0_13, %c0_14, %c0_15] : memref<3x32x32xbf16, #tpu.memory_space<vmem>>, vector<1x32x32xbf16>
    %53 = vector.shape_cast %52 : vector<1x32x32xbf16> to vector<32x32xbf16>
    %cst = arith.constant dense<0.000000e+00> : vector<130x32xf32>
    %54 = tpu.matmul %18, %53, %cst {dimension_numbers = #tpu.dot_dimension_numbers<[1], [0], [0], [1], [0, 0, 1, 1], [], []>} : vector<130x32xbf16>, vector<32x32xbf16>, vector<130x32xf32> -> vector<130x32xf32>
    %55 = vector.broadcast %47 : vector<130x1xf32> to vector<130x32xf32>
    %56 = arith.mulf %54, %55 : vector<130x32xf32>
    %c1 = arith.constant 1 : index
    %c0_16 = arith.constant 0 : index
    %c0_17 = arith.constant 0 : index
    %57 = vector.load %arg3[%c1, %c0_16, %c0_17] : memref<3x32x32xbf16, #tpu.memory_space<vmem>>, vector<1x32x32xbf16>
    %58 = vector.shape_cast %57 : vector<1x32x32xbf16> to vector<32x32xbf16>
    %cst_18 = arith.constant dense<0.000000e+00> : vector<130x32xf32>
    %59 = tpu.matmul %20, %58, %cst_18 {dimension_numbers = #tpu.dot_dimension_numbers<[1], [0], [0], [1], [0, 0, 1, 1], [], []>} : vector<130x32xbf16>, vector<32x32xbf16>, vector<130x32xf32> -> vector<130x32xf32>
    %60 = arith.addf %56, %59 : vector<130x32xf32>
    %c2 = arith.constant 2 : index
    %c0_19 = arith.constant 0 : index
    %c0_20 = arith.constant 0 : index
    %61 = vector.load %arg3[%c2, %c0_19, %c0_20] : memref<3x32x32xbf16, #tpu.memory_space<vmem>>, vector<1x32x32xbf16>
    %62 = vector.shape_cast %61 : vector<1x32x32xbf16> to vector<32x32xbf16>
    %cst_21 = arith.constant dense<0.000000e+00> : vector<130x32xf32>
    %63 = tpu.matmul %22, %62, %cst_21 {dimension_numbers = #tpu.dot_dimension_numbers<[1], [0], [0], [1], [0, 0, 1, 1], [], []>} : vector<130x32xbf16>, vector<32x32xbf16>, vector<130x32xf32> -> vector<130x32xf32>
    %64 = vector.broadcast %51 : vector<130x1xf32> to vector<130x32xf32>
    %65 = arith.mulf %63, %64 : vector<130x32xf32>
    %66 = arith.addf %60, %65 : vector<130x32xf32>
    %67 = vector.broadcast %1 : vector<1x32xf32> to vector<130x32xf32>
    %68 = arith.addf %66, %67 : vector<130x32xf32>
    %cst_22 = arith.constant dense<0.000000e+00> : vector<130xf32>
    %69 = vector.multi_reduction <add>, %68, %cst_22 [1] : vector<130x32xf32> to vector<130xf32>
    %70 = vector.shape_cast %69 : vector<130xf32> to vector<130x1xf32>
    %cst_23 = arith.constant 3.200000e+01 : f32
    %71 = vector.broadcast %cst_23 : f32 to vector<130x1xf32>
    %72 = arith.divf %70, %71 : vector<130x1xf32>
    %73 = vector.broadcast %72 : vector<130x1xf32> to vector<130x32xf32>
    %74 = arith.subf %68, %73 : vector<130x32xf32>
    %75 = arith.mulf %74, %74 : vector<130x32xf32>
    %cst_24 = arith.constant dense<0.000000e+00> : vector<130xf32>
    %76 = vector.multi_reduction <add>, %75, %cst_24 [1] : vector<130x32xf32> to vector<130xf32>
    %77 = vector.shape_cast %76 : vector<130xf32> to vector<130x1xf32>
    %cst_25 = arith.constant 3.200000e+01 : f32
    %78 = vector.broadcast %cst_25 : f32 to vector<130x1xf32>
    %79 = arith.divf %77, %78 : vector<130x1xf32>
    %80 = vector.broadcast %72 : vector<130x1xf32> to vector<130x32xf32>
    %81 = arith.subf %68, %80 : vector<130x32xf32>
    %cst_26 = arith.constant 9.99999974E-6 : f32
    %82 = vector.broadcast %cst_26 : f32 to vector<130x1xf32>
    %83 = arith.addf %79, %82 : vector<130x1xf32>
    %84 = math.rsqrt %83 : vector<130x1xf32>
    %85 = vector.broadcast %84 : vector<130x1xf32> to vector<130x32xf32>
    %86 = arith.mulf %81, %85 : vector<130x32xf32>
    %87 = vector.broadcast %2 : vector<1x32xf32> to vector<130x32xf32>
    %88 = arith.mulf %86, %87 : vector<130x32xf32>
    %89 = vector.broadcast %3 : vector<1x32xf32> to vector<130x32xf32>
    %90 = arith.addf %88, %89 : vector<130x32xf32>
    %cst_27 = arith.constant 0.000000e+00 : f32
    %91 = vector.broadcast %cst_27 : f32 to vector<130x32xf32>
    %92 = arith.maximumf %90, %91 : vector<130x32xf32>
    %93 = tpu.iota {dimensions = array<i32: 0>} : vector<128x1xi32>
    %94 = vector.broadcast %23 : i32 to vector<128x1xi32>
    %95 = arith.addi %94, %93 : vector<128x1xi32>
    %c8_i32_28 = arith.constant 8 : i32
    %c0_i32_29 = arith.constant 0 : i32
    %96 = arith.cmpi eq, %c8_i32_28, %c0_i32_29 : i32
    %c1_i32_30 = arith.constant 1 : i32
    %97 = arith.select %96, %c1_i32_30, %c8_i32_28 : i32
    %98 = vector.broadcast %97 : i32 to vector<128x1xi32>
    %99 = arith.remsi %95, %98 : vector<128x1xi32>
    %c0_i32_31 = arith.constant 0 : i32
    %100 = vector.broadcast %c0_i32_31 : i32 to vector<128x1xi32>
    %101 = arith.cmpi ne, %99, %100 : vector<128x1xi32>
    %c0_i32_32 = arith.constant 0 : i32
    %102 = vector.broadcast %c0_i32_32 : i32 to vector<128x1xi32>
    %103 = arith.cmpi slt, %99, %102 : vector<128x1xi32>
    %c0_i32_33 = arith.constant 0 : i32
    %104 = arith.cmpi slt, %97, %c0_i32_33 : i32
    %105 = vector.broadcast %104 : i1 to vector<128x1xi1>
    %106 = vector.broadcast %105 : vector<128x1xi1> to vector<128x1xi1>
    %107 = arith.xori %103, %106 : vector<128x1xi1>
    %108 = arith.andi %107, %101 : vector<128x1xi1>
    %109 = vector.broadcast %97 : i32 to vector<128x1xi32>
    %110 = arith.addi %99, %109 : vector<128x1xi32>
    %111 = arith.select %108, %110, %99 : vector<128x1xi1>, vector<128x1xi32>
    %c0_i32_34 = arith.constant 0 : i32
    %112 = vector.broadcast %c0_i32_34 : i32 to vector<128x1xi32>
    %113 = arith.cmpi ne, %111, %112 : vector<128x1xi32>
    %114 = arith.extui %113 : vector<128x1xi1> to vector<128x1xi32>
    %115 = arith.sitofp %114 : vector<128x1xi32> to vector<128x1xf32>
    %c7_i32_35 = arith.constant 7 : i32
    %116 = vector.broadcast %c7_i32_35 : i32 to vector<128x1xi32>
    %117 = arith.cmpi ne, %111, %116 : vector<128x1xi32>
    %118 = arith.extui %117 : vector<128x1xi1> to vector<128x1xi32>
    %119 = arith.sitofp %118 : vector<128x1xi32> to vector<128x1xf32>
    %120 = vector.extract_strided_slice %92 {offsets = [0, 0], sizes = [128, 32], strides = [1, 1]} : vector<130x32xf32> to vector<128x32xf32>
    %121 = arith.truncf %120 : vector<128x32xf32> to vector<128x32xbf16>
    %c0_36 = arith.constant 0 : index
    %c0_37 = arith.constant 0 : index
    %c0_38 = arith.constant 0 : index
    %122 = vector.load %arg4[%c0_36, %c0_37, %c0_38] : memref<3x32x32xbf16, #tpu.memory_space<vmem>>, vector<1x32x32xbf16>
    %123 = vector.shape_cast %122 : vector<1x32x32xbf16> to vector<32x32xbf16>
    %cst_39 = arith.constant dense<0.000000e+00> : vector<128x32xf32>
    %124 = tpu.matmul %121, %123, %cst_39 {dimension_numbers = #tpu.dot_dimension_numbers<[1], [0], [0], [1], [0, 0, 1, 1], [], []>} : vector<128x32xbf16>, vector<32x32xbf16>, vector<128x32xf32> -> vector<128x32xf32>
    %125 = vector.broadcast %115 : vector<128x1xf32> to vector<128x32xf32>
    %126 = arith.mulf %124, %125 : vector<128x32xf32>
    %127 = vector.extract_strided_slice %92 {offsets = [1, 0], sizes = [128, 32], strides = [1, 1]} : vector<130x32xf32> to vector<128x32xf32>
    %128 = arith.truncf %127 : vector<128x32xf32> to vector<128x32xbf16>
    %c1_40 = arith.constant 1 : index
    %c0_41 = arith.constant 0 : index
    %c0_42 = arith.constant 0 : index
    %129 = vector.load %arg4[%c1_40, %c0_41, %c0_42] : memref<3x32x32xbf16, #tpu.memory_space<vmem>>, vector<1x32x32xbf16>
    %130 = vector.shape_cast %129 : vector<1x32x32xbf16> to vector<32x32xbf16>
    %cst_43 = arith.constant dense<0.000000e+00> : vector<128x32xf32>
    %131 = tpu.matmul %128, %130, %cst_43 {dimension_numbers = #tpu.dot_dimension_numbers<[1], [0], [0], [1], [0, 0, 1, 1], [], []>} : vector<128x32xbf16>, vector<32x32xbf16>, vector<128x32xf32> -> vector<128x32xf32>
    %132 = arith.addf %126, %131 : vector<128x32xf32>
    %133 = vector.extract_strided_slice %92 {offsets = [2, 0], sizes = [128, 32], strides = [1, 1]} : vector<130x32xf32> to vector<128x32xf32>
    %134 = arith.truncf %133 : vector<128x32xf32> to vector<128x32xbf16>
    %c2_44 = arith.constant 2 : index
    %c0_45 = arith.constant 0 : index
    %c0_46 = arith.constant 0 : index
    %135 = vector.load %arg4[%c2_44, %c0_45, %c0_46] : memref<3x32x32xbf16, #tpu.memory_space<vmem>>, vector<1x32x32xbf16>
    %136 = vector.shape_cast %135 : vector<1x32x32xbf16> to vector<32x32xbf16>
    %cst_47 = arith.constant dense<0.000000e+00> : vector<128x32xf32>
    %137 = tpu.matmul %134, %136, %cst_47 {dimension_numbers = #tpu.dot_dimension_numbers<[1], [0], [0], [1], [0, 0, 1, 1], [], []>} : vector<128x32xbf16>, vector<32x32xbf16>, vector<128x32xf32> -> vector<128x32xf32>
    %138 = vector.broadcast %119 : vector<128x1xf32> to vector<128x32xf32>
    %139 = arith.mulf %137, %138 : vector<128x32xf32>
    %140 = arith.addf %132, %139 : vector<128x32xf32>
    %141 = vector.broadcast %4 : vector<1x32xf32> to vector<128x32xf32>
    %142 = arith.addf %140, %141 : vector<128x32xf32>
    %cst_48 = arith.constant dense<0.000000e+00> : vector<128xf32>
    %143 = vector.multi_reduction <add>, %142, %cst_48 [1] : vector<128x32xf32> to vector<128xf32>
    %144 = vector.shape_cast %143 : vector<128xf32> to vector<128x1xf32>
    %cst_49 = arith.constant 3.200000e+01 : f32
    %145 = vector.broadcast %cst_49 : f32 to vector<128x1xf32>
    %146 = arith.divf %144, %145 : vector<128x1xf32>
    %147 = vector.broadcast %146 : vector<128x1xf32> to vector<128x32xf32>
    %148 = arith.subf %142, %147 : vector<128x32xf32>
    %149 = arith.mulf %148, %148 : vector<128x32xf32>
    %cst_50 = arith.constant dense<0.000000e+00> : vector<128xf32>
    %150 = vector.multi_reduction <add>, %149, %cst_50 [1] : vector<128x32xf32> to vector<128xf32>
    %151 = vector.shape_cast %150 : vector<128xf32> to vector<128x1xf32>
    %cst_51 = arith.constant 3.200000e+01 : f32
    %152 = vector.broadcast %cst_51 : f32 to vector<128x1xf32>
    %153 = arith.divf %151, %152 : vector<128x1xf32>
    %154 = vector.broadcast %146 : vector<128x1xf32> to vector<128x32xf32>
    %155 = arith.subf %142, %154 : vector<128x32xf32>
    %cst_52 = arith.constant 9.99999974E-6 : f32
    %156 = vector.broadcast %cst_52 : f32 to vector<128x1xf32>
    %157 = arith.addf %153, %156 : vector<128x1xf32>
    %158 = math.rsqrt %157 : vector<128x1xf32>
    %159 = vector.broadcast %158 : vector<128x1xf32> to vector<128x32xf32>
    %160 = arith.mulf %155, %159 : vector<128x32xf32>
    %161 = vector.broadcast %5 : vector<1x32xf32> to vector<128x32xf32>
    %162 = arith.mulf %160, %161 : vector<128x32xf32>
    %163 = vector.broadcast %6 : vector<1x32xf32> to vector<128x32xf32>
    %164 = arith.addf %162, %163 : vector<128x32xf32>
    %cst_53 = arith.constant 0.000000e+00 : f32
    %165 = vector.broadcast %cst_53 : f32 to vector<128x32xf32>
    %166 = arith.maximumf %164, %165 : vector<128x32xf32>
    %167 = vector.broadcast %7 : vector<1x32xf32> to vector<128x32xf32>
    %168 = arith.mulf %166, %167 : vector<128x32xf32>
    %cst_54 = arith.constant dense<0.000000e+00> : vector<128xf32>
    %169 = vector.multi_reduction <add>, %168, %cst_54 [1] : vector<128x32xf32> to vector<128xf32>
    %170 = vector.broadcast %8 : f32 to vector<128xf32>
    %171 = arith.addf %169, %170 : vector<128xf32>
    %cst_55 = arith.constant 0.000000e+00 : f32
    %172 = vector.broadcast %cst_55 : f32 to vector<128xf32>
    %173 = arith.maximumf %171, %172 : vector<128xf32>
    %c0_56 = arith.constant 0 : index
    %c0_57 = arith.constant 0 : index
    %174 = vector.load %arg7[%c0_56, %c0_57] : memref<1x128xf32, #tpu.memory_space<vmem>>, vector<1x128xf32>
    %175 = vector.shape_cast %174 : vector<1x128xf32> to vector<128xf32>
    %176 = vector.shape_cast %173 : vector<128xf32> to vector<1x128xf32>
    tpu.vector_store %arg7[%c0_56, %c0_57], %176 {strides = array<i32>} : memref<1x128xf32, #tpu.memory_space<vmem>>, vector<1x128xf32>,
    return
  }
  func.func @transform_0(%arg0: i32) -> (i32, i32) {
    %c0_i32 = arith.constant 0 : i32
    %c0_i32_0 = arith.constant 0 : i32
    return %arg0, %c0_i32 : i32, i32
  }
  func.func @transform_1(%arg0: i32) -> (i32, i32, i32) {
    %c0_i32 = arith.constant 0 : i32
    %c0_i32_0 = arith.constant 0 : i32
    %c0_i32_1 = arith.constant 0 : i32
    return %arg0, %c0_i32, %c0_i32_0 : i32, i32, i32
  }
  func.func @transform_2(%arg0: i32) -> (i32, i32, i32) {
    %c0_i32 = arith.constant 0 : i32
    %c0_i32_0 = arith.constant 0 : i32
    %c0_i32_1 = arith.constant 0 : i32
    %c0_i32_2 = arith.constant 0 : i32
    return %c0_i32, %c0_i32_0, %c0_i32_1 : i32, i32, i32
  }
  func.func @transform_3(%arg0: i32) -> (i32, i32, i32) {
    %c0_i32 = arith.constant 0 : i32
    %c0_i32_0 = arith.constant 0 : i32
    %c0_i32_1 = arith.constant 0 : i32
    %c0_i32_2 = arith.constant 0 : i32
    return %c0_i32, %c0_i32_0, %c0_i32_1 : i32, i32, i32
  }
  func.func @transform_4(%arg0: i32) -> (i32, i32) {
    %c0_i32 = arith.constant 0 : i32
    %c0_i32_0 = arith.constant 0 : i32
    %c0_i32_1 = arith.constant 0 : i32
    return %c0_i32, %c0_i32_0 : i32, i32
  }
  func.func @transform_5(%arg0: i32) -> (i32, i32) {
    %c0_i32 = arith.constant 0 : i32
    %c0_i32_0 = arith.constant 0 : i32
    %c0_i32_1 = arith.constant 0 : i32
    return %c0_i32, %c0_i32_0 : i32, i32
  }
  func.func @transform_6(%arg0: i32) -> (i32, i32) {
    %c0_i32 = arith.constant 0 : i32
    %c0_i32_0 = arith.constant 0 : i32
    return %c0_i32, %arg0 : i32, i32
  }
}

</mosaic_0001>

<bundles_post_ra>
// kernel: tpu_custom_call.1
= control target key start
LH: loop header
LB: loop body
LE: loop exit
PB: predicated region body
PF: predicated region fallthrough
CT: control target
= control target key end

     0   :  { %12 = vsyncpa [#allocation4], 0  ;;  %s4892_s0 = inlined_call_operand.vmem [shape: bf16[128,32], index: 0, kind: input, shape index: {}]   ;;  %s4893_s1 = inlined_call_operand.vmem [shape: bf16[1,8,32], index: 1, kind: input, shape index: {}]   ;;  %s4894_s2 = inlined_call_operand.vmem [shape: bf16[3,32,32], index: 2, kind: input, shape index: {}]   ;;  %s4895_s3 = inlined_call_operand.hbm [shape: bf16[3,32,32], index: 3, kind: input, shape index: {}]   ;;  %s4896_s4 = inlined_call_operand.vmem [shape: f32[8,32], index: 4, kind: input, shape index: {}]   ;;  %s4897_s5 = inlined_call_operand.<no memory space> [shape: f32[1,1], index: 5, kind: input, shape index: {}]   ;;  %s4898_s6 = inlined_call_operand.hbm [shape: f32[1,128], index: 6, kind: output, shape index: {}]  }
   0x1   :  { %13 = vsyncpa [#allocation5], 0  ;;  %s3362_s21 = smov [#allocation3]  }
   0x2   :  { %s25_s22 = sshll.u32 %s3362_s21, 4  ;;  %s26_s22 = int_to_ptr.vmem [resolvable:$true] %s25_s22 }
   0x3   :  { %s3326_s23 = scalar_lea.vmem %s26_s22, 768  ;;  %p3331_p1 = scmp.lt.s32.totalorder %s26_s22, %s26_s22 }
   0x4   :  { %p3327_p0 = scmp.ne.s32.totalorder %s26_s22, %s3326_s23  ;;  %p3332_p2 = scmp.lt.s32.totalorder %s3326_s23, %s3326_s23 }
   0x6   :  { %p3333_p3 = por %p3332_p2, %p3331_p1 }
   0x8   :  { %p3334_p4 = pnand %p3333_p3, %p3327_p0 }
   0xa   :  { %3337 = shalt.err (!%p3334_p4)
}
   0xb   :  { %s3363_s24 = smov 64   ;;  %s3364_s25 = smov 4  }
   0xc   :  { %31 = dma.hbm_to_vmem [thread:$0]  %s4895_s3, 768, %s26_s22, [#allocation4], %s3363_s24, %s3363_s24, %s3364_s25  }
   0xd   :  { %3358 = dma.done.wait [#allocation4], 768  }
   0xe   :  { %3359 = vsyncadd [#allocation4], 4294966528  ;;  %v4915_v0 = vmov 0.0   ;;  %vm3366_vm0 = vmmov 0   ;;  %v3239_v1 = vld [vmem:[%s4894_s2 + $0x8] sm:$0xff]   ;;  %v3240_v2 = vld [vmem:[%s4894_s2] sm:$0xff]  }
   0xf   :  { %3049 = vmatprep.subr.bf16.mxu0 %v4915_v0  ;;  %3053 = vmatprep.mubr.msk.bf16.mxu0 %vm3366_vm0, %v4915_v0  ;;  %v2948_v3 = vld [vmem:[%s4892_s0] sm:$0xff]   ;;  %v3241_v8 = vld [vmem:[%s4894_s2 + $0x18] sm:$0xff]   ;;  %vm95_vm1 = vcmask 1041408   ;;  %vm515_vm2 = vcmask 261120   ;;  %v2979_v9 = vld [vmem:[%s4892_s0 + $0x8] sm:$0xff]   ;;  %vm906_vm4 = vcmask 1046528  }
  0x10   :  { %3229 = vmatprep.subr.bf16.mxu1 %v4915_v0  ;;  %3097 = vmatprep.mubr.msk.bf16.mxu1 %vm3366_vm0, %v4915_v0  ;;  %v74_v4 = vld [vmem:[%s4893_s1] sm:$0xf]  ;;  %v2949_v5 = vunpack.c.l.bf16 %v2948_v3  ;;  %v2950_v6 = vunpack.c.h.bf16 %v2948_v3  ;;  %v3242_v13 = vld [vmem:[%s4894_s2 + $0x10] sm:$0xff]   ;;  %v2953_v14 = vunpack.c.l.bf16 %v2979_v9  ;;  %v2981_v16 = vld [vmem:[%s4892_s0 + $0x18] sm:$0xff]   ;;  %v2954_v17 = vunpack.c.h.bf16 %v2979_v9 }
  0x11   :  { %3050 = vmatpush3.bf16.msra.mxu0 %v3239_v1  ;;  %v75_v7 = vunpack.c.l.bf16 %v74_v4  ;;  %3231 = vmatpush3.bf16.msra.mxu1 %v3241_v8  ;;  %v2980_v15 = vld [vmem:[%s4892_s0 + $0x10] sm:$0xff]   ;;  %v2961_v20 = vunpack.c.l.bf16 %v2981_v16  ;;  %v2982_v21 = vld [vmem:[%s4892_s0 + $0x20] sm:$0xff]   ;;  %v2962_v25 = vunpack.c.h.bf16 %v2981_v16  ;;  %v2983_v48 = vld [vmem:[%s4892_s0 + $0x28] sm:$0xff]   ;;  %vm669_vm3 = vsmask.f32 7424 }
  0x12   :  { %3051 = vmatprep.subr.bf16.mxu0 %v4915_v0  ;;  %v96_v11 = vrot.slane %v2949_v5, 6  ;;  %v97_v12 = vrot.slane %v2950_v6, 6  ;;  %3230 = vmatprep.subr.bf16.mxu1 %v4915_v0  ;;  %v2957_v18 = vunpack.c.l.bf16 %v2980_v15  ;;  %v2958_v19 = vunpack.c.h.bf16 %v2980_v15  ;;  %v2984_v51 = vld [vmem:[%s4892_s0 + $0x30] sm:$0xff]   ;;  %v2985_v59 = vld [vmem:[%s4892_s0 + $0x38] sm:$0xff]  }
  0x13   :  { %v3431_v10 = vrot.slane %v75_v7, 2  ;;  %v99_v24 = vrot.slane %v2953_v14, 6  ;;  %v101_v27 = vrot.slane %v2954_v17, 6  ;;  %v107_v31 = vrot.slane %v2961_v20, 6 }
  0x14   :  { %v98_v22 = vsel %vm95_vm1, %v96_v11, %v97_v12  ;;  %v103_v28 = vrot.slane %v2957_v18, 6  ;;  %v105_v29 = vrot.slane %v2958_v19, 6  ;;  %v109_v32 = vrot.slane %v2962_v25, 6 }
  0x15   :  { %3052 = vmatpush3.bf16.msra.mxu0 %v3240_v2  ;;  %v144_v23 = vsel %vm95_vm1, %v3431_v10, %v96_v11  ;;  %3232 = vmatpush3.bf16.msra.mxu1 %v3242_v13  ;;  %v100_v30 = vsel %vm95_vm1, %v97_v12, %v99_v24  ;;  %v2965_v33 = vunpack.c.l.bf16 %v2982_v21  ;;  %v102_v34 = vsel %vm95_vm1, %v99_v24, %v101_v27 }
  0x16   :  { %3089 = vmatprep.subr.bf16.mxu0 %v4915_v0  ;;  %v3450_v26 = vpack.c.bf16 %v98_v22, %v144_v23  ;;  %v104_v35 = vsel %vm95_vm1, %v101_v27, %v103_v28  ;;  %v106_v36 = vsel %vm95_vm1, %v103_v28, %v105_v29  ;;  %v2966_v37 = vunpack.c.h.bf16 %v2982_v21 }
  0x17   :  { %v3460_v38 = vpack.c.bf16 %v102_v34, %v100_v30  ;;  %v3462_v39 = vpack.c.bf16 %v106_v36, %v104_v35  ;;  %v108_v40 = vsel %vm95_vm1, %v105_v29, %v107_v31  ;;  %v110_v41 = vsel %vm95_vm1, %v107_v31, %v109_v32 }
  0x18   :  { %3054 = vmatmul.mubr.msk.bf16.vlgmr.msra.gmra.mxu0 %vm515_vm2, %v3450_v26  ;;  %v111_v42 = vrot.slane %v2965_v33, 6  ;;  %v113_v43 = vrot.slane %v2966_v37, 6  ;;  %v3470_v47 = vpack.c.bf16 %v110_v41, %v108_v40  ;;  %v2969_v53 = vunpack.c.l.bf16 %v2983_v48 }
  0x19   :  { %3090 = vmatpush3.bf16.msra.mxu0 %v3241_v8  ;;  %3057 = vmatprep.mubr.msk.bf16.mxu0 %vm3366_vm0, %v4915_v0  ;;  %v676_v44 = vshll.u32 %v3460_v38, 16  ;;  %v680_v45 = vshrl.u32 %v3460_v38, 16  ;;  %v683_v46 = vshll.u32 %v3462_v39, 16  ;;  %v687_v52 = vshrl.u32 %v3462_v39, 16 }
  0x1a   :  { %3091 = vmatprep.subr.bf16.mxu0 %v4915_v0  ;;  %v2970_v54 = vunpack.c.h.bf16 %v2983_v48  ;;  %v690_v56 = vshll.u32 %v3470_v47, 16  ;;  %v112_v57 = vsel %vm95_vm1, %v109_v32, %v111_v42  ;;  %v114_v58 = vsel %vm95_vm1, %v111_v42, %v113_v43 }
  0x1b   :  { %v3475_v49 = vrot.slane %v676_v44, 1  ;;  %v685_v50 = vrot.slane %v683_v46, 1  ;;  %v2973_v60 = vunpack.c.l.bf16 %v2984_v51  ;;  %v2974_v61 = vunpack.c.h.bf16 %v2984_v51 }
  0x1c   :  { %v3495_v63 = vpack.c.bf16 %v114_v58, %v112_v57  ;;  %v115_v1 = vrot.slane %v2969_v53, 6  ;;  %v2977_v2 = vunpack.c.l.bf16 %v2985_v59  ;;  %v692_v4 = vrot.slane %v690_v56, 1 }
  0x1d   :  { %3092 = vmatpush3.bf16.msra.mxu0 %v3242_v13  ;;  %v682_v55 = vor.u32 %v680_v45, %v3475_v49  ;;  %v689_v3 = vor.u32 %v687_v52, %v685_v50  ;;  %v117_v5 = vrot.slane %v2970_v54, 6  ;;  %v2978_v6 = vunpack.c.h.bf16 %v2985_v59 }
  0x1e   :  { %3129 = vmatprep.subr.bf16.mxu0 %v4915_v0  ;;  %v119_v7 = vrot.slane %v2973_v60, 6  ;;  %v121_v8 = vrot.slane %v2974_v61, 6  ;;  %v123_v9 = vrot.slane %v2977_v2, 6  ;;  %v672_v12 = vshll.u32 %v3450_v26, 16 }
  0x1f   :  { %v686_v62 = vsel %vm669_vm3, %v682_v55, %v685_v50  ;;  %v125_v11 = vrot.slane %v2978_v6, 6  ;;  %v907_v13 = vrot.slane %v3450_v26, 1  ;;  %v694_v14 = vshrl.u32 %v3470_v47, 16 }
  0x20   :  { %3058 = vmatmul.mubr.msk.bf16.gmra.mxu0 %vm515_vm2, %v3460_v38  ;;  %3098 = vmatmul.mubr.msk.bf16.vlgmr.msra.gmra.mxu1 %vm515_vm2, %v686_v62  ;;  %v697_v15 = vshll.u32 %v3495_v63, 16  ;;  %v908_v16 = vrot.slane %v3460_v38, 1  ;;  %v910_v17 = vrot.slane %v3462_v39, 1  ;;  %v693_v18 = vsel %vm669_vm3, %v689_v3, %v692_v4 }
  0x21   :  { %3061 = vmatprep.mubr.msk.bf16.mxu0 %vm3366_vm0, %v4915_v0  ;;  %3101 = vmatprep.mubr.msk.bf16.mxu1 %vm3366_vm0, %v4915_v0  ;;  %v116_v19 = vsel %vm95_vm1, %v113_v43, %v115_v1  ;;  %v118_v20 = vsel %vm95_vm1, %v115_v1, %v117_v5  ;;  %v670_v21 = vshrl.u32 %v3450_v26, 16  ;;  %v120_v22 = vsel %vm95_vm1, %v117_v5, %v119_v7 }
  0x22   :  { %v122_v23 = vsel %vm95_vm1, %v119_v7, %v121_v8  ;;  %v124_v24 = vsel %vm95_vm1, %v121_v8, %v123_v9  ;;  %v126_v25 = vsel %vm95_vm1, %v123_v9, %v125_v11  ;;  %v145_v27 = vsel %vm95_vm1, %v125_v11, %v3431_v10  ;;  %v3243_v9 = vld [vmem:[%s4894_s2 + $0x28] sm:$0xff]   ;;  %v3244_v11 = vld [vmem:[%s4894_s2 + $0x20] sm:$0xff]  }
  0x23   :  { %v674_v28 = vrot.slane %v672_v12, 1  ;;  %v3520_v26 = vsel %vm906_vm4, %v907_v13, %v908_v16  ;;  %v3523_v29 = vsel %vm906_vm4, %v908_v16, %v910_v17  ;;  %v696_v30 = vor.u32 %v694_v14, %v692_v4 }
  0x24   :  { %v699_v31 = vrot.slane %v697_v15, 1  ;;  %v151_v32 = vpack.c.bf16 %v118_v20, %v116_v19  ;;  %v152_v33 = vpack.c.bf16 %v122_v23, %v120_v22  ;;  %v153_v34 = vpack.c.bf16 %v126_v25, %v124_v24 }
  0x25   :  { %v675_v35 = vor.u32 %v674_v28, %v670_v21  ;;  %v912_v10 = vrot.slane %v3470_v47, 1  ;;  %v3529_v36 = vpack.c.bf16 %v145_v27, %v145_v27  ;;  %v914_v37 = vrot.slane %v3495_v63, 1 }
  0x26   :  { %v916_v38 = vrot.slane %v151_v32, 1  ;;  %v918_v41 = vrot.slane %v152_v33, 1  ;;  %v920_v42 = vrot.slane %v153_v34, 1  ;;  %v700_v43 = vsel %vm669_vm3, %v696_v30, %v699_v31 }
  0x27   :  { %v3535_v40 = vsel %vm906_vm4, %v910_v17, %v912_v10  ;;  %v701_v44 = vshrl.u32 %v3495_v63, 16  ;;  %v704_v45 = vshll.u32 %v151_v32, 16  ;;  %v915_v46 = vsel %vm906_vm4, %v912_v10, %v914_v37 }
  0x28   :  { %3062 = vmatmul.mubr.msk.bf16.gmra.mxu0 %vm515_vm2, %v3462_v39  ;;  %3102 = vmatmul.mubr.msk.bf16.gmra.mxu1 %vm515_vm2, %v693_v18  ;;  %v679_v39 = vsel %vm669_vm3, %v675_v35, %v3475_v49  ;;  %v3541_v48 = vsel %vm906_vm4, %v914_v37, %v916_v38  ;;  %v3544_v50 = vsel %vm906_vm4, %v916_v38, %v918_v41  ;;  %v922_v51 = vrot.slane %v3529_v36, 1 }
  0x29   :  { %3065 = vmatprep.mubr.msk.bf16.mxu0 %vm3366_vm0, %v4915_v0  ;;  %3105 = vmatprep.mubr.msk.bf16.mxu1 %vm3366_vm0, %v4915_v0  ;;  %v3547_v49 = vsel %vm906_vm4, %v918_v41, %v920_v42  ;;  %v703_v53 = vor.u32 %v701_v44, %v699_v31  ;;  %v706_v54 = vrot.slane %v704_v45, 1  ;;  %v708_v56 = vshrl.u32 %v151_v32, 16 }
  0x2a   :  { %v3557_v52 = vsel %vm906_vm4, %v920_v42, %v922_v51  ;;  %v711_v57 = vshll.u32 %v152_v33, 16  ;;  %v715_v60 = vshrl.u32 %v152_v33, 16  ;;  %v718_v61 = vshll.u32 %v153_v34, 16 }
  0x2b   :  { %v707_v55 = vsel %vm669_vm3, %v703_v53, %v706_v54  ;;  %v722_v2 = vshrl.u32 %v153_v34, 16  ;;  %v725_v3 = vshll.u32 %v3529_v36, 16  ;;  %v729_v7 = vshrl.u32 %v3529_v36, 16 }
  0x2c   :  { %v713_v58 = vrot.slane %v711_v57, 1  ;;  %v4899_v12 = vlaneseq }
  0x2d   :  { %v727_v5 = vrot.slane %v725_v3, 1 }
  0x2e   :  { %v717_v62 = vor.u32 %v715_v60, %v713_v58  ;;  %v3643_v13 = vshrl.u32 %v4899_v12, 7 }
  0x2f   :  { %v731_v8 = vor.u32 %v729_v7, %v727_v5 }
  0x30   :  { %3066 = vmatmul.mubr.msk.bf16.gmra.mxu0 %vm515_vm2, %v3470_v47  ;;  %3106 = vmatmul.mubr.msk.bf16.gmra.mxu1 %vm515_vm2, %v700_v43  ;;  %v710_v47 = vor.u32 %v708_v56, %v706_v54  ;;  %4938 = vst [vmem:[#allocation9_spill] sm:$0xff] %v3643_v13  ;;  %v3646_v14 = vadd.s32 16, %v3643_v13  ;;  %v3652_v16 = vadd.s32 24, %v3643_v13  ;;  %v3659_v19 = vadd.s32 32, %v3643_v13 }
  0x31   :  { %3069 = vmatprep.mubr.msk.bf16.mxu0 %vm3366_vm0, %v4915_v0  ;;  %3109 = vmatprep.mubr.msk.bf16.mxu1 %vm3366_vm0, %v4915_v0  ;;  %v3664_v22 = vadd.s32 40, %v3643_v13  ;;  %v3682_v30 = vadd.s32 48, %v3643_v13  ;;  %v3694_v38 = vadd.s32 56, %v3643_v13  ;;  %v3710_v56 = vadd.s32 72, %v3643_v13 }
  0x32   :  { %v714_v59 = vsel %vm669_vm3, %v710_v47, %v713_v58  ;;  %v3649_v15 = vadd.s32 7, %v3646_v14  ;;  %v3656_v18 = vadd.s32 7, %v3652_v16  ;;  %v3670_v24 = vadd.s32 7, %v3659_v19 }
  0x33   :  { %v3691_v37 = vadd.s32 7, %v3682_v30 }
  0x34   :  { %v4914_v17 = vand.u32 7, %v3649_v15  ;;  %v4913_v23 = vand.u32 7, %v3656_v18 }
  0x36   :  { %vm399_vm5 = vcmp.ne.s32.totalorder %v4914_v17, 0  ;;  %vm400_vm6 = vcmp.ne.s32.totalorder %v4913_v23, 0 }
  0x37   :  { %v2812_v28 = vsel %vm399_vm5, 1.0, %v4915_v0  ;;  %v2813_v35 = vsel %vm400_vm6, 1.0, %v4915_v0 }
  0x38   :  { %3070 = vmatmul.mubr.msk.bf16.gmra.mxu0 %vm515_vm2, %v3495_v63  ;;  %3110 = vmatmul.mubr.msk.bf16.gmra.mxu1 %vm515_vm2, %v707_v55  ;;  %v720_v63 = vrot.slane %v718_v61, 1 }
  0x39   :  { %3073 = vmatprep.mubr.msk.bf16.mxu0 %vm3366_vm0, %v4915_v0  ;;  %3113 = vmatprep.mubr.msk.bf16.mxu1 %vm3366_vm0, %v4915_v0 }
  0x3a   :  { %v721_v1 = vsel %vm669_vm3, %v717_v62, %v720_v63  ;;  %v724_v4 = vor.u32 %v722_v2, %v720_v63  ;;  %v3722_v2 = vadd.s32 7, %v3710_v56 }
  0x3c   :  { %v728_v6 = vsel %vm669_vm3, %v724_v4, %v727_v5  ;;  %v3730_v5 = vadd.s32 80, %v3643_v13 }
  0x40   :  { %3074 = vmatmul.mubr.msk.bf16.gmra.mxu0 %vm515_vm2, %v151_v32  ;;  %3114 = vmatmul.mubr.msk.bf16.gmra.mxu1 %vm515_vm2, %v714_v59 }
  0x41   :  { %3077 = vmatprep.mubr.msk.bf16.mxu0 %vm3366_vm0, %v4915_v0  ;;  %3117 = vmatprep.mubr.msk.bf16.mxu1 %vm3366_vm0, %v4915_v0 }
  0x48   :  { %3078 = vmatmul.mubr.msk.bf16.gmra.mxu0 %vm515_vm2, %v152_v33  ;;  %3118 = vmatmul.mubr.msk.bf16.gmra.mxu1 %vm515_vm2, %v721_v1 }
  0x49   :  { %3081 = vmatprep.mubr.msk.bf16.mxu0 %vm3366_vm0, %v4915_v0  ;;  %3121 = vmatprep.mubr.msk.bf16.mxu1 %vm3366_vm0, %v4915_v0 }
  0x50   :  { %3082 = vmatmul.mubr.msk.bf16.gmra.mxu0 %vm515_vm2, %v153_v34  ;;  %3122 = vmatmul.mubr.msk.bf16.gmra.mxu1 %vm515_vm2, %v728_v6 }
  0x51   :  { %3085 = vmatprep.mubr.msk.bf16.mxu0 %vm3366_vm0, %v4915_v0  ;;  %3125 = vmatprep.mubr.msk.bf16.mxu1 %vm3366_vm0, %v4915_v0 }
  0x58   :  { %3086 = vmatmul.mubr.msk.bf16.gmra.mxu0 %vm515_vm2, %v3529_v36  ;;  %3126 = vmatmul.mubr.msk.bf16.gmra.mxu1 %vm515_vm2, %v731_v8 }
  0x59   :  { %3093 = vmatprep.mubr.msk.bf16.mxu0 %vm3366_vm0, %v4915_v0 }
  0x60   :  { %3094 = vmatmul.mubr.msk.bf16.vlgmr.msra.gmra.mxu0 %vm515_vm2, %v679_v39 }
  0x61   :  { %3130 = vmatpush3.bf16.msra.mxu0 %v3243_v9  ;;  %3133 = vmatprep.mubr.msk.bf16.mxu0 %vm3366_vm0, %v4915_v0 }
  0x62   :  { %3131 = vmatprep.subr.bf16.mxu0 %v4915_v0 }
  0x65   :  { %3132 = vmatpush3.bf16.msra.mxu0 %v3244_v11 }
  0x68   :  { %3134 = vmatmul.mubr.msk.bf16.vlgmr.msra.gmra.mxu0 %vm515_vm2, %v3520_v26  ;;  %v3676_v26 = vadd.s32 7, %v3664_v22 }
  0x69   :  { %3137 = vmatprep.mubr.msk.bf16.mxu0 %vm3366_vm0, %v4915_v0 }
  0x6a   :  { %v4910_v10 = vand.u32 7, %v3676_v26 }
  0x6c   :  { %vm402_vm8 = vcmp.ne.s32.totalorder %v4910_v10, 0 }
  0x6d   :  { %v2815_v55 = vsel %vm402_vm8, 1.0, %v4915_v0 }
  0x70   :  { %3138 = vmatmul.mubr.msk.bf16.gmra.mxu0 %vm515_vm2, %v3523_v29  ;;  %v4911_v29 = vand.u32 7, %v3670_v24 }
  0x71   :  { %3141 = vmatprep.mubr.msk.bf16.mxu0 %vm3366_vm0, %v4915_v0 }
  0x72   :  { %vm401_vm7 = vcmp.ne.s32.totalorder %v4911_v29, 0 }
  0x73   :  { %v2814_v44 = vsel %vm401_vm7, 1.0, %v4915_v0 }
  0x78   :  { %3142 = vmatmul.mubr.msk.bf16.gmra.mxu0 %vm515_vm2, %v3535_v40 }
  0x79   :  { %3145 = vmatprep.mubr.msk.bf16.mxu0 %vm3366_vm0, %v4915_v0 }
  0x80   :  { %3146 = vmatmul.mubr.msk.bf16.gmra.mxu0 %vm515_vm2, %v915_v46  ;;  %v4908_v46 = vand.u32 7, %v3691_v37 }
  0x81   :  { %3149 = vmatprep.mubr.msk.bf16.mxu0 %vm3366_vm0, %v4915_v0 }
  0x82   :  { %vm403_vm9 = vcmp.ne.s32.totalorder %v4908_v46, 0 }
  0x83   :  { %v2816_v1 = vsel %vm403_vm9, 1.0, %v4915_v0 }
  0x88   :  { %3150 = vmatmul.mubr.msk.bf16.gmra.mxu0 %vm515_vm2, %v3541_v48  ;;  %v3703_v48 = vadd.s32 7, %v3694_v38 }
  0x89   :  { %3153 = vmatprep.mubr.msk.bf16.mxu0 %vm3366_vm0, %v4915_v0 }
  0x8a   :  { %v4906_v47 = vand.u32 7, %v3703_v48 }
  0x8c   :  { %vm404_vm10 = vcmp.ne.s32.totalorder %v4906_v47, 0 }
  0x90   :  { %3154 = vmatmul.mubr.msk.bf16.gmra.mxu0 %vm515_vm2, %v3544_v50  ;;  %v3706_v50 = vadd.s32 64, %v3643_v13 }
  0x91   :  { %3157 = vmatprep.mubr.msk.bf16.mxu0 %vm3366_vm0, %v4915_v0 }
  0x92   :  { %v3718_v58 = vadd.s32 7, %v3706_v50 }
  0x94   :  { %v4905_v4 = vand.u32 7, %v3718_v58 }
  0x96   :  { %vm405_vm11 = vcmp.ne.s32.totalorder %v4905_v4, 0 }
  0x98   :  { %3158 = vmatmul.mubr.msk.bf16.gmra.mxu0 %vm515_vm2, %v3547_v49 }
  0x99   :  { %3161 = vmatprep.mubr.msk.bf16.mxu0 %vm3366_vm0, %v4915_v0 }
  0xa0   :  { %3162 = vmatmul.mubr.msk.bf16.gmra.mxu0 %vm515_vm2, %v3557_v52 }
  0xa1   :  { %3165 = vmatprep.mubr.msk.bf16.mxu0 %vm3366_vm0, %v4915_v0 }
  0xa8   :  { %3166 = vmatmul.mubr.msk.bf16.gmra.mxu0 %vm515_vm2, %v922_v51 }
  0xd8   :  { %v3661_v20 = vpop.f32.mrf.mxu0 }
  0xda   :  { %v3055_v21 = vpop.f32.mrf.mxu0 }
  0xdb   :  { %v2817_v21 = vsel %vm404_vm10, 1.0, %v4915_v0 }
  0xdc   :  { %v3672_v25 = vpop.f32.mrf.mxu0 }
  0xde   :  { %v3056_v27 = vpop.f32.mrf.mxu0 }
  0xdf   :  { %v4904_v27 = vand.u32 7, %v3722_v2 }
  0xe0   :  { %v585_v31 = vpop.f32.mrf.mxu0  ;;  %v813_v34 = vpop.f32.mrf.mxu1 }
  0xe1   :  { %v649_v32 = vmul.f32 %v2812_v28, %v585_v31  ;;  %v3739_v31 = vadd.s32 7, %v3730_v5  ;;  %vm406_vm12 = vcmp.ne.s32.totalorder %v4904_v27, 0 }
  0xe2   :  { %v3059_v33 = vpop.f32.mrf.mxu0  ;;  %v3099_v40 = vpop.f32.mrf.mxu1 }
  0xe3   :  { %v3686_v36 = vadd.f32 %v813_v34, %v649_v32  ;;  %v3742_v32 = vadd.s32 88, %v3643_v13 }
  0xe4   :  { %v588_v39 = vpop.f32.mrf.mxu0  ;;  %v816_v43 = vpop.f32.mrf.mxu1 }
  0xe5   :  { %v650_v41 = vmul.f32 %v2813_v35, %v588_v39 }
  0xe6   :  { %v3060_v42 = vpop.f32.mrf.mxu0  ;;  %v3100_v51 = vpop.f32.mrf.mxu1 }
  0xe7   :  { %v3699_v45 = vadd.f32 %v816_v43, %v650_v41  ;;  %v2818_v41 = vsel %vm405_vm11, 1.0, %v4915_v0  ;;  %v4903_v43 = vand.u32 7, %v3739_v31 }
  0xe8   :  { %v593_v49 = vpop.f32.mrf.mxu0  ;;  %v821_v54 = vpop.f32.mrf.mxu1 }
  0xe9   :  { %v651_v52 = vmul.f32 %v2814_v44, %v593_v49  ;;  %v3751_v44 = vadd.s32 7, %v3742_v32  ;;  %v3754_v49 = vadd.s32 96, %v3643_v13  ;;  %vm407_vm13 = vcmp.ne.s32.totalorder %v4903_v43, 0 }
  0xea   :  { %v3063_v53 = vpop.f32.mrf.mxu0  ;;  %v3103_v60 = vpop.f32.mrf.mxu1 }
  0xeb   :  { %v3712_v57 = vadd.f32 %v821_v54, %v651_v52  ;;  %4939 = vst [vmem:[#allocation10_spill] sm:$0xff] %v3754_v49  ;;  %v3758_v60 = vadd.s32 104, %v3643_v13 }
  0xec   :  { %v596_v59 = vpop.f32.mrf.mxu0  ;;  %v824_v63 = vpop.f32.mrf.mxu1 }
  0xed   :  { %v652_v61 = vmul.f32 %v2815_v55, %v596_v59  ;;  %v2819_v59 = vsel %vm406_vm12, 1.0, %v4915_v0  ;;  %4940 = vst [vmem:[#allocation11_spill] sm:$0xff] %v3758_v60 }
  0xee   :  { %v3064_v62 = vpop.f32.mrf.mxu0  ;;  %v3104_v7 = vpop.f32.mrf.mxu1 }
  0xef   :  { %v3724_v3 = vadd.f32 %v824_v63, %v652_v61  ;;  %v4901_v62 = vand.u32 7, %v3751_v44  ;;  %v3766_v63 = vadd.s32 7, %v3754_v49  ;;  %v4944_v49 = vand.u32 7, %v3649_v15 }
  0xf0   :  { %v601_v6 = vpop.f32.mrf.mxu0  ;;  %v829_v11 = vpop.f32.mrf.mxu1 }
  0xf1   :  { %v653_v8 = vmul.f32 %v2816_v1, %v601_v6  ;;  %vm408_vm14 = vcmp.ne.s32.totalorder %v4901_v62, 0  ;;  %vm450_vm11 = vcmp.ne.s32.totalorder %v4944_v49, 7 }
  0xf2   :  { %v3067_v9 = vpop.f32.mrf.mxu0  ;;  %v3107_v34 = vpop.f32.mrf.mxu1 }
  0xf3   :  { %v3734_v28 = vadd.f32 %v829_v11, %v653_v8  ;;  %v2820_v11 = vsel %vm407_vm13, 1.0, %v4915_v0  ;;  %v4900_v34 = vand.u32 7, %v3766_v63 }
  0xf4   :  { %v604_v33 = vpop.f32.mrf.mxu0  ;;  %v832_v40 = vpop.f32.mrf.mxu1 }
  0xf5   :  { %v654_v35 = vmul.f32 %v2817_v21, %v604_v33  ;;  %v3770_v21 = vadd.s32 7, %v3758_v60  ;;  %vm409_vm15 = vcmp.ne.s32.totalorder %v4900_v34, 0  ;;  %v4943_v60 = vmov 0.0  }
  0xf6   :  { %v3068_v39 = vpop.f32.mrf.mxu0  ;;  %v3108_v52 = vpop.f32.mrf.mxu1 }
  0xf7   :  { %v3747_v42 = vadd.f32 %v832_v40, %v654_v35  ;;  %v3778_v35 = vadd.s32 112, %v3643_v13 }
  0xf8   :  { %v609_v51 = vpop.f32.mrf.mxu0  ;;  %v837_v55 = vpop.f32.mrf.mxu1 }
  0xf9   :  { %v655_v53 = vmul.f32 %v2818_v41, %v609_v51  ;;  %4941 = vst [vmem:[#allocation12_spill] sm:$0xff] %v3778_v35 }
  0xfa   :  { %v3071_v54 = vpop.f32.mrf.mxu0  ;;  %v3111_v6 = vpop.f32.mrf.mxu1 }
  0xfb   :  { %v3760_v61 = vadd.f32 %v837_v55, %v655_v53  ;;  %v2821_v53 = vsel %vm408_vm14, 1.0, %v4915_v0  ;;  %v4902_v54 = vand.u32 7, %v3770_v21 }
  0xfc   :  { %v612_v1 = vpop.f32.mrf.mxu0  ;;  %v840_v9 = vpop.f32.mrf.mxu1 }
  0xfd   :  { %v656_v7 = vmul.f32 %v2819_v59, %v612_v1  ;;  %v3787_v59 = vadd.s32 7, %v3778_v35  ;;  %v3790_v1 = vadd.s32 120, %v3643_v13  ;;  %vm410_vm0 = vcmp.ne.s32.totalorder %v4902_v54, 0 }
  0xfe   :  { %v3072_v8 = vpop.f32.mrf.mxu0  ;;  %v3112_v40 = vpop.f32.mrf.mxu1 }
  0xff   :  { %v3772_v33 = vadd.f32 %v840_v9, %v656_v7  ;;  %4942 = vst [vmem:[#allocation13_spill] sm:$0xff] %v3790_v1 }
 0x100   :  { %v617_v39 = vpop.f32.mrf.mxu0  ;;  %v845_v52 = vpop.f32.mrf.mxu1 }
 0x101   :  { %v657_v41 = vmul.f32 %v2820_v11, %v617_v39  ;;  %v2822_v39 = vsel %vm409_vm15, 1.0, %v4915_v0 }
 0x102   :  { %v3075_v51 = vpop.f32.mrf.mxu0  ;;  %v3115_v7 = vpop.f32.mrf.mxu1 }
 0x103   :  { %v3782_v55 = vadd.f32 %v845_v52, %v657_v41  ;;  %v4907_v41 = vand.u32 7, %v3787_v59  ;;  %v3799_v51 = vadd.s32 7, %v3790_v1  ;;  %v173_v52 = vadd.s32 128, %v3643_v13 }
 0x104   :  { %v620_v6 = vpop.f32.mrf.mxu0  ;;  %v848_v11 = vpop.f32.mrf.mxu1 }
 0x105   :  { %v658_v8 = vmul.f32 %v2821_v53, %v620_v6  ;;  %vm411_vm1 = vcmp.ne.s32.totalorder %v4907_v41, 0 }
 0x106   :  { %v3076_v9 = vpop.f32.mrf.mxu0  ;;  %v3116_v34 = vpop.f32.mrf.mxu1 }
 0x107   :  { %v3795_v40 = vadd.f32 %v848_v11, %v658_v8  ;;  %v2823_v9 = vsel %vm410_vm0, 1.0, %v4915_v0  ;;  %v4909_v8 = vand.u32 7, %v3799_v51  ;;  %v3808_v11 = vadd.s32 7, %v173_v52 }
 0x108   :  { %v625_v12 = vpop.f32.mrf.mxu0  ;;  %v853_v6 = vpop.f32.mrf.mxu1 }
 0x109   :  { %v659_v7 = vmul.f32 %v2822_v39, %v625_v12  ;;  %v2824_v12 = vsel %vm411_vm1, 1.0, %v4915_v0  ;;  %vm412_vm5 = vcmp.ne.s32.totalorder %v4909_v8, 0  ;;  %v4912_v39 = vand.u32 7, %v3808_v11 }
 0x10a   :  { %v3079_v53 = vpop.f32.mrf.mxu0  ;;  %v3119_v43 = vpop.f32.mrf.mxu1  ;;  %v2825_v46 = vsel %vm412_vm5, 1.0, %v4915_v0 }
 0x10b   :  { %v3803_v62 = vadd.f32 %v853_v6, %v659_v7  ;;  %vm413_vm6 = vcmp.ne.s32.totalorder %v4912_v39, 0 }
 0x10c   :  { %v628_v54 = vpop.f32.mrf.mxu0  ;;  %v856_v47 = vpop.f32.mrf.mxu1  ;;  %v2826_v8 = vsel %vm413_vm6, 1.0, %v4915_v0 }
 0x10d   :  { %v660_v27 = vmul.f32 %v2823_v9, %v628_v54 }
 0x10e   :  { %v3080_v4 = vpop.f32.mrf.mxu0  ;;  %v3120_v53 = vpop.f32.mrf.mxu1 }
 0x10f   :  { %v3811_v34 = vadd.f32 %v856_v47, %v660_v27 }
 0x110   :  { %v633_v7 = vpop.f32.mrf.mxu0  ;;  %v861_v52 = vpop.f32.mrf.mxu1 }
 0x111   :  { %v661_v6 = vmul.f32 %v2824_v12, %v633_v7  ;;  %v3826_v7 = vadd.s32 8, %v3643_v13 }
 0x112   :  { %v3083_v41 = vpop.f32.mrf.mxu0  ;;  %v3123_v47 = vpop.f32.mrf.mxu1 }
 0x113   :  { %v3817_v43 = vadd.f32 %v861_v52, %v661_v6  ;;  %v176_v41 = vadd.s32 7, %v3643_v13 }
 0x114   :  { %v636_v4 = vpop.f32.mrf.mxu0  ;;  %v864_v9 = vpop.f32.mrf.mxu1 }
 0x115   :  { %v662_v27 = vmul.f32 %v2825_v46, %v636_v4  ;;  %v197_v4 = vand.u32 7, %v176_v41 }
 0x116   :  { %v3084_v54 = vpop.f32.mrf.mxu0  ;;  %v3124_v12 = vpop.f32.mrf.mxu1 }
 0x117   :  { %v3822_v10 = vadd.f32 %v864_v9, %v662_v27  ;;  %v177_v54 = vadd.s32 7, %v3826_v7  ;;  %vm397_vm7 = vcmp.ne.s32.totalorder %v197_v4, 0  ;;  %vm448_vm8 = vcmp.ne.s32.totalorder %v197_v4, 7 }
 0x118   :  { %v641_v53 = vpop.f32.mrf.mxu0  ;;  %v869_v29 = vpop.f32.mrf.mxu1  ;;  %v2810_v1 = vsel %vm397_vm7, 1.0, %v4943_v60 }
 0x119   :  { %v663_v6 = vmul.f32 %v2826_v8, %v641_v53  ;;  %v204_v12 = vand.u32 7, %v177_v54 }
 0x11a   :  { %v3087_v52 = vpop.f32.mrf.mxu0  ;;  %v3127_v46 = vpop.f32.mrf.mxu1 }
 0x11b   :  { %v3828_v39 = vadd.f32 %v869_v29, %v663_v6  ;;  %vm398_vm9 = vcmp.ne.s32.totalorder %v204_v12, 0  ;;  %v1103_v29 = vsub.s32 0, %v3643_v13  ;;  %v2827_v6 = vsel %vm448_vm8, 1.0, %v4943_v60 }
 0x11c   :  { %v644_v47 = vpop.f32.mrf.mxu0  ;;  %v872_v27 = vpop.f32.mrf.mxu1  ;;  %vm449_vm10 = vcmp.ne.s32.totalorder %v204_v12, 7 }
 0x11d   :  { %v2828_v54 = vsel %vm449_vm10, 1.0, %v4943_v60 }
 0x11e   :  { %v3088_v23 = vpop.f32.mrf.mxu0  ;;  %v3128_v17 = vpop.f32.mrf.mxu1 }
 0x11f   :  { %v3837_v23 = vld [vmem:[%s4896_s4] sm:$0xff]  ;;  %v647_v17 = vmul.f32 %v2810_v1, %v3661_v20 }
 0x120   :  { %v805_v9 = vpop.f32.mrf.mxu0  ;;  %v3842_v46 = vrot.slane %v3837_v23, %v1103_v29 }
 0x121   :  { %v875_v52 = vadd.f32 %v805_v9, %v647_v17 }
 0x122   :  { %v3095_v0 = vpop.f32.mrf.mxu0 }
 0x123   :  { %v2811_v0 = vsel %vm398_vm9, 1.0, %v4943_v60 }
 0x124   :  { %v808_v8 = vpop.f32.mrf.mxu0  ;;  %v648_v27 = vmul.f32 %v2811_v0, %v3672_v25 }
 0x126   :  { %v3096_v53 = vpop.f32.mrf.mxu0  ;;  %v876_v20 = vadd.f32 %v808_v8, %v648_v27 }
 0x128   :  { %v997_v41 = vpop.f32.mrf.mxu0 }
 0x129   :  { %v1067_v47 = vmul.f32 %v2827_v6, %v997_v41  ;;  %v2829_v6 = vsel %vm450_vm11, 1.0, %v4943_v60  ;;  %v4945_v41 = vand.u32 7, %v3656_v18 }
 0x12a   :  { %v3135_v4 = vpop.f32.mrf.mxu0 }
 0x12b   :  { %v1084_v53 = vadd.f32 %v1067_v47, %v875_v52  ;;  %vm451_vm12 = vcmp.ne.s32.totalorder %v4945_v41, 7  ;;  %v4946_v47 = vand.u32 7, %v3670_v24 }
 0x12c   :  { %v1000_v35 = vpop.f32.mrf.mxu0  ;;  %v2830_v8 = vsel %vm451_vm12, 1.0, %v4943_v60 }
 0x12d   :  { %v1068_v1 = vmul.f32 %v2828_v54, %v1000_v35  ;;  %v3849_v12 = vadd.f32 %v3842_v46, %v1084_v53  ;;  %vm452_vm13 = vcmp.ne.s32.totalorder %v4946_v47, 7  ;;  %v4949_v47 = vand.u32 7, %v3703_v48 }
 0x12e   :  { %v3136_v9 = vpop.f32.mrf.mxu0  ;;  %v2831_v53 = vsel %vm452_vm13, 1.0, %v4943_v60  ;;  %vm1170_vm13 = vcmask 254976  }
 0x12f   :  { %v1085_v29 = vadd.f32 %v1068_v1, %v876_v20  ;;  %v1122_v17 = vsel %vm515_vm2, %v3849_v12, 0.0  ;;  %v4947_v1 = vand.u32 7, %v3676_v26  ;;  %vm455_vm0 = vcmp.ne.s32.totalorder %v4949_v47, 7 }
 0x130   :  { %v1005_v25 = vpop.f32.mrf.mxu0  ;;  %1123 = vadd.xlane.f32.xlu0 %v1122_v17 }
 0x131   :  { %v1069_v15 = vmul.f32 %v2829_v6, %v1005_v25  ;;  %v3857_v49 = vadd.f32 %v3842_v46, %v1085_v29  ;;  %vm453_vm14 = vcmp.ne.s32.totalorder %v4947_v1, 7  ;;  %v4948_v25 = vand.u32 7, %v3691_v37 }
 0x132   :  { %v3139_v35 = vpop.f32.mrf.mxu0  ;;  %v2832_v17 = vsel %vm453_vm14, 1.0, %v4943_v60 }
 0x133   :  { %v1086_v0 = vadd.f32 %v1069_v15, %v3686_v36  ;;  %v1125_v52 = vsel %vm515_vm2, %v3857_v49, 0.0  ;;  %vm454_vm15 = vcmp.ne.s32.totalorder %v4948_v25, 7 }
 0x134   :  { %v1008_v4 = vpop.f32.mrf.mxu0  ;;  %1126 = vadd.xlane.f32.xlu0 %v1125_v52 }
 0x135   :  { %v1070_v18 = vmul.f32 %v2830_v8, %v1008_v4  ;;  %v3866_v54 = vadd.f32 %v3842_v46, %v1086_v0  ;;  %v2833_v0 = vsel %vm454_vm15, 1.0, %v4943_v60 }
 0x136   :  { %v3140_v27 = vpop.f32.mrf.mxu0 }
 0x137   :  { %v1087_v20 = vadd.f32 %v1070_v18, %v3699_v45  ;;  %v1128_v36 = vsel %vm515_vm2, %v3866_v54, 0.0 }
 0x138   :  { %v1013_v9 = vpop.f32.mrf.mxu0  ;;  %1129 = vadd.xlane.f32.xlu1 %v1128_v36  ;;  %v4950_v36 = vand.u32 7, %v3718_v58 }
 0x139   :  { %v1071_v24 = vmul.f32 %v2831_v53, %v1013_v9  ;;  %v3875_v6 = vadd.f32 %v3842_v46, %v1087_v20  ;;  %v2834_v53 = vsel %vm455_vm0, 1.0, %v4943_v60 }
 0x13a   :  { %v3143_v29 = vpop.f32.mrf.mxu0  ;;  %vm456_vm1 = vcmp.ne.s32.totalorder %v4950_v36, 7 }
 0x13b   :  { %v1088_v41 = vadd.f32 %v1071_v24, %v3712_v57  ;;  %v1131_v45 = vsel %vm515_vm2, %v3875_v6, 0.0  ;;  %v2835_v29 = vsel %vm456_vm1, 1.0, %v4943_v60 }
 0x13c   :  { %v1016_v15 = vpop.f32.mrf.mxu0  ;;  %1132 = vadd.xlane.f32.xlu1 %v1131_v45 }
 0x13d   :  { %v1072_v26 = vmul.f32 %v2832_v17, %v1016_v15  ;;  %v3884_v35 = vadd.f32 %v3842_v46, %v1088_v41  ;;  %v4951_v41 = vand.u32 7, %v3722_v2 }
 0x13e   :  { %v3144_v8 = vpop.f32.mrf.mxu0 }
 0x13f   :  { %v1089_v52 = vadd.f32 %v1072_v26, %v3724_v3  ;;  %v1134_v57 = vsel %vm515_vm2, %v3884_v35, 0.0  ;;  %vm457_vm5 = vcmp.ne.s32.totalorder %v4951_v41, 7 }
 0x140   :  { %v1021_v4 = vpop.f32.mrf.mxu0  ;;  %1135 = vadd.xlane.f32.xlu0 %v1134_v57  ;;  %v2836_v26 = vsel %vm457_vm5, 1.0, %v4943_v60 }
 0x141   :  { %v1073_v37 = vmul.f32 %v2833_v0, %v1021_v4  ;;  %v3893_v18 = vadd.f32 %v3842_v46, %v1089_v52  ;;  %v4952_v0 = vand.u32 7, %v3739_v31 }
 0x142   :  { %v3147_v27 = vpop.f32.mrf.mxu0 }
 0x143   :  { %v1090_v20 = vadd.f32 %v1073_v37, %v3734_v28  ;;  %v1137_v3 = vsel %vm515_vm2, %v3893_v18, 0.0  ;;  %vm458_vm6 = vcmp.ne.s32.totalorder %v4952_v0, 7  ;;  %v4953_v27 = vand.u32 7, %v3751_v44 }
 0x144   :  { %v1024_v1 = vpop.f32.mrf.mxu0  ;;  %1138 = vadd.xlane.f32.xlu1 %v1137_v3  ;;  %v2837_v4 = vsel %vm458_vm6, 1.0, %v4943_v60  ;;  %v4956_v0 = vand.u32 7, %v3787_v59 }
 0x145   :  { %v1074_v48 = vmul.f32 %v2834_v53, %v1024_v1  ;;  %v3902_v9 = vadd.f32 %v3842_v46, %v1090_v20  ;;  %vm459_vm7 = vcmp.ne.s32.totalorder %v4953_v27, 7 }
 0x146   :  { %v3148_v24 = vpop.f32.mrf.mxu0  ;;  %v2838_v36 = vsel %vm459_vm7, 1.0, %v4943_v60  ;;  %vm462_vm10 = vcmp.ne.s32.totalorder %v4956_v0, 7 }
 0x147   :  { %v1091_v17 = vadd.f32 %v1074_v48, %v3747_v42  ;;  %v1140_v28 = vsel %vm515_vm2, %v3902_v9, 0.0  ;;  %v4954_v48 = vand.u32 7, %v3766_v63 }
 0x148   :  { %v1029_v45 = vpop.f32.mrf.mxu0  ;;  %1141 = vadd.xlane.f32.xlu0 %v1140_v28 }
 0x149   :  { %v1075_v58 = vmul.f32 %v2835_v29, %v1029_v45  ;;  %v3911_v25 = vadd.f32 %v3842_v46, %v1091_v17  ;;  %vm460_vm8 = vcmp.ne.s32.totalorder %v4954_v48, 7  ;;  %v4955_v45 = vand.u32 7, %v3770_v21 }
 0x14a   :  { %v3151_v15 = vpop.f32.mrf.mxu0  ;;  %v2839_v28 = vsel %vm460_vm8, 1.0, %v4943_v60 }
 0x14b   :  { %v1092_v8 = vadd.f32 %v1075_v58, %v3760_v61  ;;  %v1143_v42 = vsel %vm515_vm2, %v3911_v25, 0.0  ;;  %vm461_vm9 = vcmp.ne.s32.totalorder %v4955_v45, 7 }
 0x14c   :  { %v1032_v52 = vpop.f32.mrf.mxu0  ;;  %1144 = vadd.xlane.f32.xlu1 %v1143_v42 }
 0x14d   :  { %v1076_v2 = vmul.f32 %v2836_v26, %v1032_v52  ;;  %v3920_v57 = vadd.f32 %v3842_v46, %v1092_v8  ;;  %v2840_v8 = vsel %vm461_vm9, 1.0, %v4943_v60 }
 0x14e   :  { %v3152_v47 = vpop.f32.mrf.mxu0 }
 0x14f   :  { %v1093_v37 = vadd.f32 %v1076_v2, %v3772_v33  ;;  %v1146_v61 = vsel %vm515_vm2, %v3920_v57, 0.0 }
 0x150   :  { %v1037_v53 = vpop.f32.mrf.mxu0  ;;  %1147 = vadd.xlane.f32.xlu0 %v1146_v61  ;;  %v4957_v61 = vand.u32 7, %v3799_v51 }
 0x151   :  { %v1077_v31 = vmul.f32 %v2837_v4, %v1037_v53  ;;  %v3929_v20 = vadd.f32 %v3842_v46, %v1093_v37  ;;  %v2841_v4 = vsel %vm462_vm10, 1.0, %v4943_v60 }
 0x152   :  { %v3155_v3 = vpop.f32.mrf.mxu0  ;;  %vm463_vm11 = vcmp.ne.s32.totalorder %v4957_v61, 7 }
 0x153   :  { %v1094_v1 = vadd.f32 %v1077_v31, %v3782_v55  ;;  %v1149_v33 = vsel %vm515_vm2, %v3929_v20, 0.0  ;;  %v2842_v3 = vsel %vm463_vm11, 1.0, %v4943_v60 }
 0x154   :  { %v1040_v24 = vpop.f32.mrf.mxu0  ;;  %1150 = vadd.xlane.f32.xlu1 %v1149_v33 }
 0x155   :  { %v1078_v44 = vmul.f32 %v2838_v36, %v1040_v24  ;;  %v3938_v29 = vadd.f32 %v3842_v46, %v1094_v1  ;;  %v4958_v1 = vand.u32 7, %v3808_v11 }
 0x156   :  { %v3156_v17 = vpop.f32.mrf.mxu0 }
 0x157   :  { %v1095_v41 = vadd.f32 %v1078_v44, %v3795_v40  ;;  %v1152_v55 = vsel %vm515_vm2, %v3938_v29, 0.0  ;;  %vm464_vm12 = vcmp.ne.s32.totalorder %v4958_v1, 7 }
 0x158   :  { %v1045_v58 = vpop.f32.mrf.mxu0  ;;  %1153 = vadd.xlane.f32.xlu0 %v1152_v55  ;;  %v2843_v44 = vsel %vm464_vm12, 1.0, %v4943_v60 }
 0x159   :  { %v1079_v63 = vmul.f32 %v2839_v28, %v1045_v58  ;;  %v3947_v15 = vadd.f32 %v3842_v46, %v1095_v41 }
 0x15a   :  { %v3159_v26 = vpop.f32.mrf.mxu0 }
 0x15b   :  { %v1096_v42 = vadd.f32 %v1079_v63, %v3803_v62  ;;  %v1155_v40 = vsel %vm515_vm2, %v3947_v15, 0.0 }
 0x15c   :  { %v1048_v52 = vpop.f32.mrf.mxu0  ;;  %1156 = vadd.xlane.f32.xlu1 %v1155_v40 }
 0x15d   :  { %v1080_v21 = vmul.f32 %v2840_v8, %v1048_v52  ;;  %v3956_v2 = vadd.f32 %v3842_v46, %v1096_v42 }
 0x15e   :  { %v3160_v47 = vpop.f32.mrf.mxu0 }
 0x15f   :  { %v1097_v37 = vadd.f32 %v1080_v21, %v3811_v34  ;;  %v1158_v62 = vsel %vm515_vm2, %v3956_v2, 0.0 }
 0x160   :  { %v1053_v27 = vpop.f32.mrf.mxu0  ;;  %1159 = vadd.xlane.f32.xlu0 %v1158_v62 }
 0x161   :  { %v1081_v59 = vmul.f32 %v2841_v4, %v1053_v27  ;;  %v3965_v53 = vadd.f32 %v3842_v46, %v1097_v37 }
 0x162   :  { %v3163_v31 = vpop.f32.mrf.mxu0 }
 0x163   :  { %v1098_v36 = vadd.f32 %v1081_v59, %v3817_v43  ;;  %v1161_v34 = vsel %vm515_vm2, %v3965_v53, 0.0 }
 0x164   :  { %v1056_v33 = vpop.f32.mrf.mxu0  ;;  %1162 = vadd.xlane.f32.xlu1 %v1161_v34 }
 0x165   :  { %v1082_v51 = vmul.f32 %v2842_v3, %v1056_v33  ;;  %v3974_v48 = vadd.f32 %v3842_v46, %v1098_v36 }
 0x166   :  { %v3164_v24 = vpop.f32.mrf.mxu0 }
 0x167   :  { %v1099_v17 = vadd.f32 %v1082_v51, %v3822_v10  ;;  %v1164_v43 = vsel %vm515_vm2, %v3974_v48, 0.0 }
 0x168   :  { %v1061_v28 = vpop.f32.mrf.mxu0  ;;  %1165 = vadd.xlane.f32.xlu0 %v1164_v43 }
 0x169   :  { %v1083_v41 = vmul.f32 %v2843_v44, %v1061_v28  ;;  %v3981_v11 = vadd.f32 %v3842_v46, %v1099_v17  ;;  %v3245_v44 = vld [vmem:[#allocation3 + $0x8] sm:$0xff]  }
 0x16a   :  { %v3167_v55 = vpop.f32.mrf.mxu0  ;;  %3169 = vmatprep.subr.bf16.mxu1 %v3245_v44 }
 0x16b   :  { %v1100_v45 = vadd.f32 %v1083_v41, %v3828_v39  ;;  %v1167_v58 = vsel %vm515_vm2, %v3981_v11, 0.0  ;;  %3170 = vmatpush3.bf16.msra.mxu1 %v3245_v44  ;;  %v3246_v44 = vld [vmem:[#allocation3] sm:$0xff]  }
 0x16c   :  { %1168 = vadd.xlane.f32.xlu1 %v1167_v58  ;;  %v1064_v63 = vpop.f32.mrf.mxu0  ;;  %3171 = vmatprep.subr.bf16.mxu1 %v3246_v44 }
 0x16d   :  { %v3987_v10 = vadd.f32 %v3842_v46, %v1100_v45 }
 0x16e   :  { %v3168_v26 = vpop.f32.mrf.mxu0 }
 0x16f   :  { %v1171_v8 = vsel %vm1170_vm13, %v3987_v10, 0.0  ;;  %3172 = vmatpush3.bf16.msra.mxu1 %v3246_v44 }
 0x170   :  { %1172 = vadd.xlane.f32.xlu0 %v1171_v8 }
 0x1b9   :  { %v1124_v42 = vpop.xlane.xlu0 %1123 }
 0x1ba   :  { %v1175_v40 = vmul.f32 0.03125, %v1124_v42 }
 0x1bc   :  { %v3992_v0 = vsub.f32 %v3849_v12, %v1175_v40 }
 0x1bd   :  { %v1127_v39 = vpop.xlane.xlu0 %1126 }
 0x1be   :  { %v1176_v52 = vmul.f32 0.03125, %v1127_v39  ;;  %v1209_v21 = vmul.f32 %v3992_v0, %v3992_v0 }
 0x1c0   :  { %v3997_v47 = vsub.f32 %v3857_v49, %v1176_v52  ;;  %v1226_v46 = vsel %vm515_vm2, %v1209_v21, 0.0 }
 0x1c1   :  { %v1130_v4 = vpop.xlane.xlu1 %1129  ;;  %1227 = vadd.xlane.f32.xlu1 %v1226_v46 }
 0x1c2   :  { %v1177_v37 = vmul.f32 0.03125, %v1130_v4  ;;  %v1210_v62 = vmul.f32 %v3997_v47, %v3997_v47 }
 0x1c4   :  { %v4003_v61 = vsub.f32 %v3866_v54, %v1177_v37  ;;  %v1229_v12 = vsel %vm515_vm2, %v1210_v62, 0.0 }
 0x1c5   :  { %v1133_v27 = vpop.xlane.xlu1 %1132  ;;  %1230 = vadd.xlane.f32.xlu0 %v1229_v12 }
 0x1c6   :  { %v1178_v59 = vmul.f32 0.03125, %v1133_v27  ;;  %v1211_v49 = vmul.f32 %v4003_v61, %v4003_v61 }
 0x1c8   :  { %v4009_v31 = vsub.f32 %v3875_v6, %v1178_v59  ;;  %v1232_v3 = vsel %vm515_vm2, %v1211_v49, 0.0 }
 0x1c9   :  { %1233 = vadd.xlane.f32.xlu1 %v1232_v3  ;;  %v1136_v36 = vpop.xlane.xlu0 %1135 }
 0x1ca   :  { %v1179_v34 = vmul.f32 0.03125, %v1136_v36  ;;  %v1212_v54 = vmul.f32 %v4009_v31, %v4009_v31 }
 0x1cc   :  { %v4015_v1 = vsub.f32 %v3884_v35, %v1179_v34  ;;  %v1235_v33 = vsel %vm515_vm2, %v1212_v54, 0.0 }
 0x1cd   :  { %v1139_v51 = vpop.xlane.xlu1 %1138  ;;  %1236 = vadd.xlane.f32.xlu0 %v1235_v33 }
 0x1ce   :  { %v1180_v24 = vmul.f32 0.03125, %v1139_v51  ;;  %v1213_v6 = vmul.f32 %v4015_v1, %v4015_v1 }
 0x1d0   :  { %v4021_v17 = vsub.f32 %v3893_v18, %v1180_v24  ;;  %v1238_v43 = vsel %vm515_vm2, %v1213_v6, 0.0 }
 0x1d1   :  { %1239 = vadd.xlane.f32.xlu1 %v1238_v43  ;;  %v1142_v28 = vpop.xlane.xlu0 %1141 }
 0x1d2   :  { %v1181_v41 = vmul.f32 0.03125, %v1142_v28  ;;  %v1214_v35 = vmul.f32 %v4021_v17, %v4021_v17 }
 0x1d4   :  { %v4027_v55 = vsub.f32 %v3902_v9, %v1181_v41  ;;  %v1241_v45 = vsel %vm515_vm2, %v1214_v35, 0.0 }
 0x1d5   :  { %v1145_v58 = vpop.xlane.xlu1 %1144  ;;  %1242 = vadd.xlane.f32.xlu0 %v1241_v45 }
 0x1d6   :  { %v1182_v63 = vmul.f32 0.03125, %v1145_v58  ;;  %v1215_v18 = vmul.f32 %v4027_v55, %v4027_v55 }
 0x1d8   :  { %v4033_v26 = vsub.f32 %v3911_v25, %v1182_v63  ;;  %v1244_v8 = vsel %vm515_vm2, %v1215_v18, 0.0 }
 0x1d9   :  { %1245 = vadd.xlane.f32.xlu1 %v1244_v8  ;;  %v1148_v42 = vpop.xlane.xlu0 %1147 }
 0x1da   :  { %v1183_v40 = vmul.f32 0.03125, %v1148_v42  ;;  %v1216_v9 = vmul.f32 %v4033_v26, %v4033_v26 }
 0x1dc   :  { %v4039_v39 = vsub.f32 %v3920_v57, %v1183_v40  ;;  %v1247_v52 = vsel %vm515_vm2, %v1216_v9, 0.0 }
 0x1dd   :  { %v1151_v21 = vpop.xlane.xlu1 %1150  ;;  %1248 = vadd.xlane.f32.xlu0 %v1247_v52 }
 0x1de   :  { %v1184_v46 = vmul.f32 0.03125, %v1151_v21  ;;  %v1217_v25 = vmul.f32 %v4039_v39, %v4039_v39 }
 0x1e0   :  { %v4045_v4 = vsub.f32 %v3929_v20, %v1184_v46  ;;  %v1250_v37 = vsel %vm515_vm2, %v1217_v25, 0.0 }
 0x1e1   :  { %1251 = vadd.xlane.f32.xlu1 %v1250_v37  ;;  %v1154_v62 = vpop.xlane.xlu0 %1153  ;;  %v4093_v37 = vld [vmem:[#allocation3 + $0x18] sm:$0xff]  }
 0x1e2   :  { %v1185_v12 = vmul.f32 0.03125, %v1154_v62  ;;  %v1218_v57 = vmul.f32 %v4045_v4, %v4045_v4  ;;  %3189 = vmatprep.subr.bf16.mxu1 %v4093_v37 }
 0x1e4   :  { %v4051_v27 = vsub.f32 %v3938_v29, %v1185_v12  ;;  %v1253_v59 = vsel %vm515_vm2, %v1218_v57, 0.0 }
 0x1e5   :  { %v1157_v49 = vpop.xlane.xlu1 %1156  ;;  %1254 = vadd.xlane.f32.xlu0 %v1253_v59 }
 0x1e6   :  { %v1186_v3 = vmul.f32 0.03125, %v1157_v49  ;;  %v1219_v20 = vmul.f32 %v4051_v27, %v4051_v27 }
 0x1e8   :  { %v4057_v36 = vsub.f32 %v3947_v15, %v1186_v3  ;;  %v1256_v34 = vsel %vm515_vm2, %v1219_v20, 0.0 }
 0x1e9   :  { %1257 = vadd.xlane.f32.xlu1 %v1256_v34  ;;  %v1160_v54 = vpop.xlane.xlu0 %1159 }
 0x1ea   :  { %v1187_v33 = vmul.f32 0.03125, %v1160_v54  ;;  %v1220_v29 = vmul.f32 %v4057_v36, %v4057_v36 }
 0x1ec   :  { %v4063_v51 = vsub.f32 %v3956_v2, %v1187_v33  ;;  %v1259_v24 = vsel %vm515_vm2, %v1220_v29, 0.0  ;;  %v1347_v33 = vsub.s32 1, %v3643_v13 }
 0x1ed   :  { %v1163_v6 = vpop.xlane.xlu1 %1162  ;;  %1260 = vadd.xlane.f32.xlu0 %v1259_v24 }
 0x1ee   :  { %v1188_v43 = vmul.f32 0.03125, %v1163_v6  ;;  %v1221_v15 = vmul.f32 %v4063_v51, %v4063_v51  ;;  %v1368_v6 = vsub.s32 2, %v3643_v13 }
 0x1f0   :  { %v4069_v28 = vsub.f32 %v3965_v53, %v1188_v43  ;;  %v1262_v41 = vsel %vm515_vm2, %v1221_v15, 0.0  ;;  %v4099_v43 = vrot.slane %v3837_v23, %v1347_v33 }
 0x1f1   :  { %1263 = vadd.xlane.f32.xlu1 %v1262_v41  ;;  %v1166_v35 = vpop.xlane.xlu0 %1165 }
 0x1f2   :  { %v1189_v2 = vmul.f32 0.03125, %v1166_v35  ;;  %v1222_v45 = vmul.f32 %v4069_v28, %v4069_v28 }
 0x1f4   :  { %v4075_v58 = vsub.f32 %v3974_v48, %v1189_v2  ;;  %v1265_v63 = vsel %vm515_vm2, %v1222_v45, 0.0  ;;  %v4103_v45 = vrot.slane %v3837_v23, %v1368_v6 }
 0x1f5   :  { %v1169_v18 = vpop.xlane.xlu1 %1168  ;;  %1266 = vadd.xlane.f32.xlu0 %v1265_v63 }
 0x1f6   :  { %v1190_v8 = vmul.f32 0.03125, %v1169_v18  ;;  %v1223_v53 = vmul.f32 %v4075_v58, %v4075_v58 }
 0x1f8   :  { %v4081_v42 = vsub.f32 %v3981_v11, %v1190_v8  ;;  %v1268_v40 = vsel %vm515_vm2, %v1223_v53, 0.0 }
 0x1f9   :  { %1269 = vadd.xlane.f32.xlu1 %v1268_v40  ;;  %v1173_v9 = vpop.xlane.xlu0 %1172 }
 0x1fa   :  { %v1191_v52 = vmul.f32 0.03125, %v1173_v9  ;;  %v1224_v48 = vmul.f32 %v4081_v42, %v4081_v42 }
 0x1fc   :  { %v4087_v21 = vsub.f32 %v3987_v10, %v1191_v52  ;;  %v1271_v46 = vsel %vm515_vm2, %v1224_v48, 0.0 }
 0x1fd   :  { %1272 = vadd.xlane.f32.xlu0 %v1271_v46 }
 0x1fe   :  { %v1225_v25 = vmul.f32 %v4087_v21, %v4087_v21 }
 0x200   :  { %v1274_v11 = vsel %vm1170_vm13, %v1225_v25, 0.0 }
 0x201   :  { %1275 = vadd.xlane.f32.xlu1 %v1274_v11 }
 0x24a   :  { %v1228_v62 = vpop.xlane.xlu1 %1227 }
 0x24b   :  { %v1277_v12 = vmul.f32 0.03125, %v1228_v62 }
 0x24d   :  { %v1294_v57 = vadd.f32 1e-05, %v1277_v12 }
 0x24e   :  { %v1231_v59 = vpop.xlane.xlu0 %1230 }
 0x24f   :  { %3251 = vrsqrt.f32 %v1294_v57  ;;  %v1278_v10 = vmul.f32 0.03125, %v1231_v59 }
 0x251   :  { %v1295_v49 = vadd.f32 1e-05, %v1278_v10 }
 0x252   :  { %v1234_v3 = vpop.xlane.xlu1 %1233 }
 0x253   :  { %3253 = vrsqrt.f32 %v1295_v49  ;;  %v1279_v20 = vmul.f32 0.03125, %v1234_v3 }
 0x255   :  { %v1296_v34 = vadd.f32 1e-05, %v1279_v20 }
 0x256   :  { %v1237_v54 = vpop.xlane.xlu0 %1236 }
 0x257   :  { %3255 = vrsqrt.f32 %v1296_v34  ;;  %v1280_v29 = vmul.f32 0.03125, %v1237_v54 }
 0x259   :  { %v1297_v24 = vadd.f32 1e-05, %v1280_v29 }
 0x25a   :  { %v1240_v44 = vpop.xlane.xlu1 %1239 }
 0x25b   :  { %3257 = vrsqrt.f32 %v1297_v24  ;;  %v1281_v15 = vmul.f32 0.03125, %v1240_v44 }
 0x25c   :  { %v3252_v41 = vpop.eup %3251 }
 0x25d   :  { %v1298_v35 = vadd.f32 1e-05, %v1281_v15  ;;  %v1328_v2 = vmul.f32 %v3252_v41, %v3992_v0 }
 0x25e   :  { %v1243_v63 = vpop.xlane.xlu0 %1242 }
 0x25f   :  { %3259 = vrsqrt.f32 %v1298_v35  ;;  %v1282_v18 = vmul.f32 0.03125, %v1243_v63  ;;  %v1349_v8 = vmul.f32 %v4099_v43, %v1328_v2 }
 0x260   :  { %v3254_v53 = vpop.eup %3253 }
 0x261   :  { %v1299_v40 = vadd.f32 1e-05, %v1282_v18  ;;  %v1329_v9 = vmul.f32 %v3254_v53, %v3997_v47  ;;  %v1370_v48 = vadd.f32 %v4103_v45, %v1349_v8 }
 0x262   :  { %v1246_v52 = vpop.xlane.xlu1 %1245 }
 0x263   :  { %3261 = vrsqrt.f32 %v1299_v40  ;;  %v1283_v46 = vmul.f32 0.03125, %v1246_v52  ;;  %v1350_v25 = vmul.f32 %v4099_v43, %v1329_v9  ;;  %v1387_v57 = vmax.f32 %v1370_v48, 0.0  ;;  %v3248_v9 = vld [vmem:[#allocation3 + $0x10] sm:$0xff]  }
 0x264   :  { %v3256_v0 = vpop.eup %3255 }
 0x265   :  { %v1330_v23 = vmul.f32 %v3256_v0, %v4003_v61  ;;  %v1300_v11 = vadd.f32 1e-05, %v1283_v46  ;;  %v1371_v62 = vadd.f32 %v4103_v45, %v1350_v25 }
 0x266   :  { %v1249_v12 = vpop.xlane.xlu0 %1248 }
 0x267   :  { %v1351_v59 = vmul.f32 %v4099_v43, %v1330_v23  ;;  %3263 = vrsqrt.f32 %v1300_v11  ;;  %v1284_v10 = vmul.f32 0.03125, %v1249_v12  ;;  %v1388_v47 = vmax.f32 %v1371_v62, 0.0  ;;  %v4134_v12 = vld [vmem:[#allocation3 + $0x28] sm:$0xff]  }
 0x268   :  { %v3258_v49 = vpop.eup %3257 }
 0x269   :  { %v1331_v3 = vmul.f32 %v3258_v49, %v4009_v31  ;;  %v1301_v20 = vadd.f32 1e-05, %v1284_v10  ;;  %v4113_v34 = vpack.c.bf16 %v1388_v47, %v1387_v57  ;;  %v1372_v54 = vadd.f32 %v4103_v45, %v1351_v59 }
 0x26a   :  { %v1252_v33 = vpop.xlane.xlu1 %1251 }
 0x26b   :  { %v1352_v61 = vmul.f32 %v4099_v43, %v1331_v3  ;;  %3265 = vrsqrt.f32 %v1301_v20  ;;  %v1285_v29 = vmul.f32 0.03125, %v1252_v33  ;;  %3173 = vmatprep.mubr.msk.bf16.mxu1 %vm515_vm2, %v4113_v34  ;;  %v1389_v41 = vmax.f32 %v1372_v54, 0.0 }
 0x26c   :  { %v3260_v24 = vpop.eup %3259  ;;  %v2099_v0 = vrot.slane %v4113_v34, 1 }
 0x26d   :  { %v1373_v6 = vadd.f32 %v4103_v45, %v1352_v61  ;;  %v1302_v44 = vadd.f32 1e-05, %v1285_v29  ;;  %v1332_v15 = vmul.f32 %v3260_v24, %v4015_v1 }
 0x26e   :  { %v1255_v31 = vpop.xlane.xlu0 %1254 }
 0x26f   :  { %3267 = vrsqrt.f32 %v1302_v44  ;;  %v1286_v35 = vmul.f32 0.03125, %v1255_v31  ;;  %v1390_v2 = vmax.f32 %v1373_v6, 0.0  ;;  %v1353_v63 = vmul.f32 %v4099_v43, %v1332_v15 }
 0x270   :  { %v3262_v18 = vpop.eup %3261 }
 0x271   :  { %v1303_v8 = vadd.f32 1e-05, %v1286_v35  ;;  %v4122_v53 = vpack.c.bf16 %v1390_v2, %v1389_v41  ;;  %v1333_v40 = vmul.f32 %v3262_v18, %v4021_v17  ;;  %v1374_v48 = vadd.f32 %v4103_v45, %v1353_v63 }
 0x272   :  { %v1258_v52 = vpop.xlane.xlu1 %1257 }
 0x273   :  { %3269 = vrsqrt.f32 %v1303_v8  ;;  %v1287_v46 = vmul.f32 0.03125, %v1258_v52  ;;  %3174 = vmatmul.mubr.msk.bf16.vlgmr.msra.gmra.mxu1 %vm515_vm2, %v4122_v53  ;;  %v1354_v1 = vmul.f32 %v4099_v43, %v1333_v40  ;;  %v2100_v23 = vrot.slane %v4122_v53, 1 }
 0x274   :  { %v3264_v25 = vpop.eup %3263  ;;  %3190 = vmatpush3.bf16.msra.mxu1 %v4093_v37  ;;  %v1391_v59 = vmax.f32 %v1374_v48, 0.0 }
 0x275   :  { %v1304_v11 = vadd.f32 1e-05, %v1287_v46  ;;  %v1375_v17 = vadd.f32 %v4103_v45, %v1354_v1  ;;  %v1334_v62 = vmul.f32 %v3264_v25, %v4027_v55  ;;  %3191 = vmatprep.subr.bf16.mxu1 %v3248_v9  ;;  %v4137_v10 = vsel %vm906_vm4, %v2099_v0, %v2100_v23 }
 0x276   :  { %v1261_v57 = vpop.xlane.xlu0 %1260 }
 0x277   :  { %3271 = vrsqrt.f32 %v1304_v11  ;;  %v1288_v47 = vmul.f32 0.03125, %v1261_v57  ;;  %v1392_v37 = vmax.f32 %v1375_v17, 0.0  ;;  %v1355_v49 = vmul.f32 %v4099_v43, %v1334_v62 }
 0x278   :  { %v3266_v3 = vpop.eup %3265  ;;  %3192 = vmatpush3.bf16.msra.mxu1 %v3248_v9 }
 0x279   :  { %v1305_v20 = vadd.f32 1e-05, %v1288_v47  ;;  %v4140_v54 = vpack.c.bf16 %v1392_v37, %v1391_v59  ;;  %v1335_v55 = vmul.f32 %v3266_v3, %v4033_v26  ;;  %3209 = vmatprep.subr.bf16.mxu1 %v4134_v12  ;;  %v1376_v61 = vadd.f32 %v4103_v45, %v1355_v49 }
 0x27a   :  { %v1264_v33 = vpop.xlane.xlu1 %1263 }
 0x27b   :  { %3273 = vrsqrt.f32 %v1305_v20  ;;  %v1289_v29 = vmul.f32 0.03125, %v1264_v33  ;;  %3177 = vmatprep.mubr.msk.bf16.mxu1 %vm515_vm2, %v4140_v54  ;;  %v1356_v24 = vmul.f32 %v4099_v43, %v1335_v55  ;;  %v2102_v44 = vrot.slane %v4140_v54, 1 }
 0x27c   :  { %v3268_v6 = vpop.eup %3267  ;;  %v1393_v35 = vmax.f32 %v1376_v61, 0.0 }
 0x27d   :  { %v1306_v15 = vadd.f32 1e-05, %v1289_v29  ;;  %v1377_v31 = vadd.f32 %v4103_v45, %v1356_v24  ;;  %v1336_v26 = vmul.f32 %v3268_v6, %v4039_v39  ;;  %v4152_v2 = vsel %vm906_vm4, %v2100_v23, %v2102_v44 }
 0x27e   :  { %v1267_v41 = vpop.xlane.xlu0 %1266 }
 0x27f   :  { %3275 = vrsqrt.f32 %v1306_v15  ;;  %v1290_v63 = vmul.f32 0.03125, %v1267_v41  ;;  %v1394_v18 = vmax.f32 %v1377_v31, 0.0  ;;  %v1357_v8 = vmul.f32 %v4099_v43, %v1336_v26 }
 0x280   :  { %v3270_v40 = vpop.eup %3269 }
 0x281   :  { %v1307_v9 = vadd.f32 1e-05, %v1290_v63  ;;  %v4155_v52 = vpack.c.bf16 %v1394_v18, %v1393_v35  ;;  %v1337_v48 = vmul.f32 %v3270_v40, %v4045_v4  ;;  %v1378_v1 = vadd.f32 %v4103_v45, %v1357_v8 }
 0x282   :  { %v1270_v46 = vpop.xlane.xlu1 %1269 }
 0x283   :  { %3277 = vrsqrt.f32 %v1307_v9  ;;  %v1291_v39 = vmul.f32 0.03125, %v1270_v46  ;;  %3178 = vmatmul.mubr.msk.bf16.gmra.mxu1 %vm515_vm2, %v4155_v52  ;;  %v1358_v25 = vmul.f32 %v4099_v43, %v1337_v48  ;;  %v2104_v23 = vrot.slane %v4155_v52, 1 }
 0x284   :  { %v3272_v0 = vpop.eup %3271  ;;  %v1395_v4 = vmax.f32 %v1378_v1, 0.0 }
 0x285   :  { %v1308_v11 = vadd.f32 1e-05, %v1291_v39  ;;  %v1379_v17 = vadd.f32 %v4103_v45, %v1358_v25  ;;  %v1338_v62 = vmul.f32 %v3272_v0, %v4051_v27  ;;  %v4166_v59 = vsel %vm906_vm4, %v2102_v44, %v2104_v23 }
 0x286   :  { %v1273_v57 = vpop.xlane.xlu0 %1272 }
 0x287   :  { %3279 = vrsqrt.f32 %v1308_v11  ;;  %v1292_v47 = vmul.f32 0.03125, %v1273_v57  ;;  %v1396_v37 = vmax.f32 %v1379_v17, 0.0  ;;  %v1359_v49 = vmul.f32 %v4099_v43, %v1338_v62 }
 0x288   :  { %v3274_v3 = vpop.eup %3273  ;;  %v1878_v17 = vshll.u32 %v4113_v34, 16 }
 0x289   :  { %v1309_v20 = vadd.f32 1e-05, %v1292_v47  ;;  %v4169_v55 = vpack.c.bf16 %v1396_v37, %v1395_v4  ;;  %v1339_v33 = vmul.f32 %v3274_v3, %v4057_v36  ;;  %v1380_v24 = vadd.f32 %v4103_v45, %v1359_v49 }
 0x28a   :  { %v1276_v61 = vpop.xlane.xlu1 %1275  ;;  %v1880_v37 = vrot.slane %v1878_v17, 1  ;;  %v1876_v3 = vshrl.u32 %v4113_v34, 16 }
 0x28b   :  { %3281 = vrsqrt.f32 %v1309_v20  ;;  %v1293_v29 = vmul.f32 0.03125, %v1276_v61  ;;  %3181 = vmatprep.mubr.msk.bf16.mxu1 %vm515_vm2, %v4169_v55  ;;  %v1360_v27 = vmul.f32 %v4099_v43, %v1339_v33  ;;  %v2106_v44 = vrot.slane %v4169_v55, 1 }
 0x28c   :  { %v3276_v6 = vpop.eup %3275  ;;  %v1397_v41 = vmax.f32 %v1380_v24, 0.0  ;;  %v1889_v24 = vshll.u32 %v4140_v54, 16 }
 0x28d   :  { %v1310_v15 = vadd.f32 1e-05, %v1293_v29  ;;  %v1381_v31 = vadd.f32 %v4103_v45, %v1360_v27  ;;  %v1340_v26 = vmul.f32 %v3276_v6, %v4063_v51  ;;  %v4182_v36 = vsel %vm906_vm4, %v2104_v23, %v2106_v44 }
 0x28e   :  { %v1881_v27 = vor.u32 %v1880_v37, %v1876_v3  ;;  %v1891_v34 = vrot.slane %v1889_v24, 1 }
 0x28f   :  { %3283 = vrsqrt.f32 %v1310_v15  ;;  %v1398_v35 = vmax.f32 %v1381_v31, 0.0  ;;  %v1361_v63 = vmul.f32 %v4099_v43, %v1340_v26  ;;  %v1886_v31 = vshrl.u32 %v4122_v53, 16 }
 0x290   :  { %v3278_v18 = vpop.eup %3277 }
 0x291   :  { %v4185_v8 = vpack.c.bf16 %v1398_v35, %v1397_v41  ;;  %v1341_v40 = vmul.f32 %v3278_v18, %v4069_v28  ;;  %v1382_v9 = vadd.f32 %v4103_v45, %v1361_v63  ;;  %v1903_v63 = vshll.u32 %v4169_v55, 16 }
 0x293   :  { %3182 = vmatmul.mubr.msk.bf16.gmra.mxu1 %vm515_vm2, %v4185_v8  ;;  %v1362_v51 = vmul.f32 %v4099_v43, %v1341_v40  ;;  %v1399_v39 = vmax.f32 %v1382_v9, 0.0  ;;  %v1907_v9 = vshrl.u32 %v4169_v55, 16 }
 0x294   :  { %v3280_v48 = vpop.eup %3279 }
 0x295   :  { %v1383_v46 = vadd.f32 %v4103_v45, %v1362_v51  ;;  %v1342_v1 = vmul.f32 %v3280_v48, %v4075_v58  ;;  %v1882_v58 = vshll.u32 %v4122_v53, 16  ;;  %v1910_v51 = vshll.u32 %v4185_v8, 16 }
 0x296   :  { %v1905_v53 = vrot.slane %v1903_v63, 1 }
 0x297   :  { %v1400_v25 = vmax.f32 %v1383_v46, 0.0  ;;  %v1363_v0 = vmul.f32 %v4099_v43, %v1342_v1  ;;  %v1884_v33 = vrot.slane %v1882_v58, 1  ;;  %v1912_v48 = vrot.slane %v1910_v51, 1 }
 0x298   :  { %v3282_v23 = vpop.eup %3281  ;;  %v1909_v1 = vor.u32 %v1907_v9, %v1905_v53 }
 0x299   :  { %v4195_v11 = vpack.c.bf16 %v1400_v25, %v1399_v39  ;;  %v1343_v28 = vmul.f32 %v3282_v23, %v4081_v42  ;;  %v1384_v57 = vadd.f32 %v4103_v45, %v1363_v0  ;;  %v1885_v15 = vsel %vm669_vm3, %v1881_v27, %v1884_v33 }
 0x29a   :  { %v1888_v41 = vor.u32 %v1886_v31, %v1884_v33  ;;  %v1913_v23 = vsel %vm669_vm3, %v1909_v1, %v1912_v48 }
 0x29b   :  { %3185 = vmatprep.mubr.msk.bf16.mxu1 %vm515_vm2, %v4195_v11  ;;  %v1364_v62 = vmul.f32 %v4099_v43, %v1343_v28  ;;  %v1401_v42 = vmax.f32 %v1384_v57, 0.0  ;;  %v1917_v39 = vshll.u32 %v4195_v11, 16  ;;  %v1914_v28 = vshrl.u32 %v4185_v8, 16 }
 0x29c   :  { %v3284_v4 = vpop.eup %3283  ;;  %v1892_v18 = vsel %vm669_vm3, %v1888_v41, %v1891_v34  ;;  %v2110_v24 = vrot.slane %v4195_v11, 1 }
 0x29d   :  { %v1385_v47 = vadd.f32 %v4103_v45, %v1364_v62  ;;  %v1344_v49 = vmul.f32 %v3284_v4, %v4087_v21  ;;  %v1896_v21 = vshll.u32 %v4155_v52, 16  ;;  %v1921_v62 = vshrl.u32 %v4195_v11, 16 }
 0x29e   :  { %v1916_v58 = vor.u32 %v1914_v28, %v1912_v48 }
 0x29f   :  { %v1402_v20 = vmax.f32 %v1385_v47, 0.0  ;;  %v1365_v61 = vmul.f32 %v4099_v43, %v1344_v49  ;;  %v1893_v43 = vshrl.u32 %v4140_v54, 16  ;;  %v1898_v26 = vrot.slane %v1896_v21, 1 }
 0x2a0   :  { %v1900_v54 = vshrl.u32 %v4155_v52, 16  ;;  %v1919_v52 = vrot.slane %v1917_v39, 1 }
 0x2a1   :  { %v4208_v29 = vpack.c.bf16 %v1402_v20, %v1401_v42  ;;  %v1386_v6 = vadd.f32 %v4103_v45, %v1365_v61  ;;  %v1895_v35 = vor.u32 %v1893_v43, %v1891_v34  ;;  %v3250_v45 = vld [vmem:[#allocation3 + $0x20] sm:$0xff]   ;;  %v2108_v61 = vrot.slane %v4185_v8, 1 }
 0x2a2   :  { %v1902_v46 = vor.u32 %v1900_v54, %v1898_v26  ;;  %v1923_v4 = vor.u32 %v1921_v62, %v1919_v52  ;;  %v1920_v47 = vsel %vm669_vm3, %v1916_v58, %v1919_v52  ;;  %v1432_v52 = vand.u32 7, %v3826_v7 }
 0x2a3   :  { %3186 = vmatmul.mubr.msk.bf16.gmra.mxu1 %vm515_vm2, %v4208_v29  ;;  %v1899_v40 = vsel %vm669_vm3, %v1895_v35, %v1898_v26  ;;  %v1403_v0 = vmax.f32 %v1386_v6, 0.0  ;;  %v1928_v3 = vshrl.u32 %v4208_v29, 16  ;;  %v2109_v27 = vsel %vm906_vm4, %v2106_v44, %v2108_v61 }
 0x2a4   :  { %3193 = vmatprep.mubr.msk.bf16.mxu1 %vm515_vm2, %v1885_v15  ;;  %v1906_v25 = vsel %vm669_vm3, %v1902_v46, %v1905_v53  ;;  %v4932_v62 = vand.u32 7, %v3659_v19  ;;  %vm1614_vm15 = vcmp.ne.s32.totalorder %v1432_v52, 0  ;;  %v4925_v7 = vand.u32 7, %v3706_v50 }
 0x2a5   :  { %v1870_v17 = vpack.c.bf16 %v1403_v0, %v1403_v0  ;;  %v1425_v0 = vand.u32 7, %v3643_v13 }
 0x2a6   :  { %vm1617_vm1 = vcmp.ne.s32.totalorder %v4932_v62, 0  ;;  %vm1621_vm8 = vcmp.ne.s32.totalorder %v4925_v7, 0 }
 0x2a7   :  { %v1932_v37 = vshll.u32 %v1870_v17, 16  ;;  %v2114_v8 = vrot.slane %v1870_v17, 1  ;;  %v1467_v17 = vand.u32 7, %v3682_v30  ;;  %v4926_v30 = vand.u32 7, %v3742_v32 }
 0x2a8   :  { %vm1661_vm13 = vcmp.ne.s32.totalorder %v1425_v0, 7 }
 0x2a9   :  { %v1934_v42 = vrot.slane %v1932_v37, 1  ;;  %vm1619_vm0 = vcmp.ne.s32.totalorder %v1467_v17, 0  ;;  %vm1624_vm10 = vcmp.ne.s32.totalorder %v4926_v30, 0  ;;  %v4371_v30 = vsel %vm1621_vm8, 1.0, %v4943_v60 }
 0x2ab   :  { %3194 = vmatmul.mubr.msk.bf16.vlgmr.msra.gmra.mxu1 %vm515_vm2, %v1892_v18 }
 0x2ac   :  { %3197 = vmatprep.mubr.msk.bf16.mxu1 %vm515_vm2, %v1899_v40  ;;  %3210 = vmatpush3.bf16.msra.mxu1 %v4134_v12  ;;  %v1924_v12 = vshll.u32 %v4208_v29, 16 }
 0x2ad   :  { %3211 = vmatprep.subr.bf16.mxu1 %v3250_v45 }
 0x2ae   :  { %v1926_v57 = vrot.slane %v1924_v12, 1  ;;  %v1446_v12 = vand.u32 7, %v3652_v16  ;;  %v4927_v16 = vand.u32 7, %v3730_v5 }
 0x2b0   :  { %3212 = vmatpush3.bf16.msra.mxu1 %v3250_v45  ;;  %v1927_v49 = vsel %vm669_vm3, %v1923_v4, %v1926_v57  ;;  %v1930_v20 = vor.u32 %v1928_v3, %v1926_v57  ;;  %v4929_v57 = vand.u32 7, %v3694_v38  ;;  %vm1616_vm14 = vcmp.ne.s32.totalorder %v1446_v12, 0  ;;  %v4963_v3 = vld [vmem:[#allocation12_spill] sm:$0xff] }
 0x2b1   :  { %vm1623_vm7 = vcmp.ne.s32.totalorder %v4927_v16, 0 }
 0x2b2   :  { %v1935_v33 = vsel %vm669_vm3, %v1930_v20, %v1934_v42  ;;  %v4931_v42 = vand.u32 7, %v4963_v3  ;;  %v2888_v20 = vsel %vm1616_vm14, 1.0, %v4943_v60  ;;  %vm1620_vm5 = vcmp.ne.s32.totalorder %v4929_v57, 0 }
 0x2b3   :  { %3198 = vmatmul.mubr.msk.bf16.gmra.mxu1 %vm515_vm2, %v1906_v25  ;;  %v1439_v25 = vand.u32 7, %v3646_v14  ;;  %v4928_v14 = vand.u32 7, %v3664_v22  ;;  %v4368_v7 = vsel %vm1623_vm7, 1.0, %v4943_v60  ;;  %vm1662_vm14 = vcmp.ne.s32.totalorder %v1432_v52, 7 }
 0x2b4   :  { %3201 = vmatprep.mubr.msk.bf16.mxu1 %vm515_vm2, %v1913_v23  ;;  %vm1627_vm12 = vcmp.ne.s32.totalorder %v4931_v42, 0 }
 0x2b5   :  { %vm1615_vm3 = vcmp.ne.s32.totalorder %v1439_v25, 0  ;;  %vm1618_vm6 = vcmp.ne.s32.totalorder %v4928_v14, 0  ;;  %vm1663_vm9 = vcmp.ne.s32.totalorder %v1439_v25, 7  ;;  %v4386_v42 = vsel %vm1627_vm12, 1.0, %v4943_v60 }
 0x2b6   :  { %v2887_v4 = vsel %vm1615_vm3, 1.0, %v4943_v60  ;;  %v4365_v25 = vsel %vm1618_vm6, 1.0, %v4943_v60  ;;  %v2903_v14 = vsel %vm1663_vm9, 1.0, %v4943_v60 }
 0x2bb   :  { %3202 = vmatmul.mubr.msk.bf16.gmra.mxu1 %vm515_vm2, %v1920_v47 }
 0x2bc   :  { %3205 = vmatprep.mubr.msk.bf16.mxu1 %vm515_vm2, %v1927_v49  ;;  %v4930_v49 = vand.u32 7, %v3710_v56 }
 0x2be   :  { %vm1622_vm11 = vcmp.ne.s32.totalorder %v4930_v49, 0  ;;  %v4378_v49 = vsel %vm1624_vm10, 1.0, %v4943_v60 }
 0x2c3   :  { %3206 = vmatmul.mubr.msk.bf16.gmra.mxu1 %vm515_vm2, %v1935_v33  ;;  %v2886_v33 = vsel %vm1614_vm15, 1.0, %v4943_v60  ;;  %vm4404_vm15 = vcmp.ne.s32.totalorder %v1467_v17, 7  ;;  %v4975_v17 = vand.u32 7, %v3694_v38 }
 0x2c4   :  { %3213 = vmatprep.mubr.msk.bf16.mxu1 %vm515_vm2, %v4137_v10  ;;  %v2112_v10 = vrot.slane %v4208_v29, 1  ;;  %v2907_v38 = vsel %vm4404_vm15, 1.0, %v4943_v60  ;;  %vm2707_vm15 = vcmask 261312  }
 0x2cb   :  { %3214 = vmatmul.mubr.msk.bf16.vlgmr.msra.gmra.mxu1 %vm515_vm2, %v4152_v2  ;;  %v2111_v2 = vsel %vm906_vm4, %v2108_v61, %v2110_v24 }
 0x2cc   :  { %3217 = vmatprep.mubr.msk.bf16.mxu1 %vm515_vm2, %v4166_v59  ;;  %v2113_v59 = vsel %vm906_vm4, %v2110_v24, %v2112_v10 }
 0x2d3   :  { %3218 = vmatmul.mubr.msk.bf16.gmra.mxu1 %vm515_vm2, %v4182_v36  ;;  %v2115_v36 = vsel %vm906_vm4, %v2112_v10, %v2114_v8  ;;  %vm1613_vm4 = vcmp.ne.s32.totalorder %v1425_v0, 0  ;;  %v2891_v10 = vsel %vm1619_vm0, 1.0, %v4943_v60  ;;  %v2283_v8 = vsub.s32 3, %v3643_v13 }
 0x2d4   :  { %3221 = vmatprep.mubr.msk.bf16.mxu1 %vm515_vm2, %v2109_v27  ;;  %v2885_v47 = vsel %vm1613_vm4, 1.0, %v4943_v60  ;;  %v4965_v27 = vld [vmem:[#allocation10_spill] sm:$0xff]  ;;  %vm1664_vm4 = vcmp.ne.s32.totalorder %v1446_v12, 7  ;;  %v4383_v0 = vsel %vm1622_vm11, 1.0, %v4943_v60  ;;  %v2901_v13 = vsel %vm1661_vm13, 1.0, %v4943_v60 }
 0x2d5   :  { %v4935_v24 = vand.u32 7, %v4965_v27 }
 0x2d7   :  { %vm1625_vm3 = vcmp.ne.s32.totalorder %v4935_v24, 0 }
 0x2db   :  { %3222 = vmatmul.mubr.msk.bf16.gmra.mxu1 %vm515_vm2, %v2111_v2  ;;  %v2889_v2 = vsel %vm1617_vm1, 1.0, %v4943_v60  ;;  %vm4420_vm1 = vcmp.ne.s32.totalorder %v4975_v17, 7 }
 0x2dc   :  { %3225 = vmatprep.mubr.msk.bf16.mxu1 %vm515_vm2, %v2113_v59 }
 0x2e3   :  { %3226 = vmatmul.mubr.msk.bf16.gmra.mxu1 %vm515_vm2, %v2115_v36  ;;  %v2892_v36 = vsel %vm1620_vm5, 1.0, %v4943_v60 }
 0x333   :  { %v4264_v55 = vpop.f32.mrf.mxu1 }
 0x334   :  { %v1856_v57 = vmul.f32 %v4264_v55, %v2887_v4  ;;  %v4392_v55 = vld [vmem:[%s4896_s4] sm:$0xff] }
 0x335   :  { %v4266_v44 = vpop.f32.mrf.mxu1  ;;  %4968 = vst [vmem:[#allocation19_spill] sm:$0xff] %v4392_v55  ;;  %v4395_v4 = vrot.slane %v4392_v55, %v2283_v8 }
 0x336   :  { %v1854_v24 = vmul.f32 %v2885_v47, %v4266_v44 }
 0x337   :  { %v4268_v11 = vpop.f32.mrf.mxu1 }
 0x338   :  { %v1857_v8 = vmul.f32 %v4268_v11, %v2888_v20 }
 0x339   :  { %v4270_v29 = vpop.f32.mrf.mxu1 }
 0x33a   :  { %v1855_v52 = vmul.f32 %v2886_v33, %v4270_v29 }
 0x343   :  { %v4272_v6 = vpop.f32.mrf.mxu1 }
 0x345   :  { %v4274_v15 = vpop.f32.mrf.mxu1 }
 0x347   :  { %v4276_v21 = vpop.f32.mrf.mxu1 }
 0x349   :  { %v4278_v34 = vpop.f32.mrf.mxu1 }
 0x353   :  { %v4280_v31 = vpop.f32.mrf.mxu1 }
 0x355   :  { %v4282_v43 = vpop.f32.mrf.mxu1 }
 0x357   :  { %v4284_v26 = vpop.f32.mrf.mxu1 }
 0x359   :  { %v4286_v41 = vpop.f32.mrf.mxu1 }
 0x363   :  { %v4288_v35 = vpop.f32.mrf.mxu1 }
 0x365   :  { %v4290_v63 = vpop.f32.mrf.mxu1 }
 0x366   :  { %4959 = vst [vmem:[#allocation14_spill] sm:$0xff] %v4290_v63  ;;  %v2908_v63 = vsel %vm4420_vm1, 1.0, %v4943_v60  ;;  %vm2721_vm1 = vcmask 392512  }
 0x367   :  { %v4292_v45 = vpop.f32.mrf.mxu1 }
 0x368   :  { %4960 = vst [vmem:[#allocation15_spill] sm:$0xff] %v4292_v45  ;;  %v1861_v45 = vmul.f32 %v4276_v21, %v2892_v36  ;;  %v1859_v21 = vmul.f32 %v4365_v25, %v4278_v34  ;;  %v4985_v36 = vand.u32 7, %v3706_v50 }
 0x369   :  { %v4294_v18 = vpop.f32.mrf.mxu1 }
 0x36a   :  { %4961 = vst [vmem:[#allocation16_spill] sm:$0xff] %v4294_v18  ;;  %v4969_v18 = vld [vmem:[#allocation13_spill] sm:$0xff]  ;;  %vm4478_vm7 = vcmp.ne.s32.totalorder %v4985_v36, 7 }
 0x36b   :  { %v4296_v40 = vpop.f32.mrf.mxu1  ;;  %v4991_v34 = vand.u32 7, %v4969_v18 }
 0x36c   :  { %v2071_v12 = vadd.f32 %v4296_v40, %v1856_v57  ;;  %v2902_v57 = vsel %vm1662_vm14, 1.0, %v4943_v60  ;;  %vm2700_vm14 = vcmask 195712  }
 0x36d   :  { %v4298_v51 = vpop.f32.mrf.mxu1  ;;  %vm4490_vm9 = vcmp.ne.s32.totalorder %v4991_v34, 0 }
 0x36e   :  { %v2069_v44 = vadd.f32 %v4298_v51, %v1854_v24  ;;  %v2900_v18 = vsel %vm4490_vm9, 1.0, %v4943_v60  ;;  %vm2756_vm9 = vcmask 720512  }
 0x36f   :  { %v4300_v53 = vpop.f32.mrf.mxu1 }
 0x370   :  { %v2072_v11 = vadd.f32 %v4300_v53, %v1857_v8  ;;  %v1858_v8 = vmul.f32 %v2889_v2, %v4274_v15 }
 0x371   :  { %v4302_v54 = vpop.f32.mrf.mxu1 }
 0x372   :  { %v2070_v33 = vadd.f32 %v4302_v54, %v1855_v52 }
 0x373   :  { %v4304_v9 = vpop.f32.mrf.mxu1 }
 0x375   :  { %v4306_v48 = vpop.f32.mrf.mxu1 }
 0x376   :  { %v2073_v52 = vadd.f32 %v4306_v48, %v1858_v8 }
 0x377   :  { %v4308_v46 = vpop.f32.mrf.mxu1 }
 0x379   :  { %v4310_v1 = vpop.f32.mrf.mxu1 }
 0x37b   :  { %v4312_v39 = vpop.f32.mrf.mxu1 }
 0x37d   :  { %v4316_v23 = vpop.f32.mrf.mxu1 }
 0x37f   :  { %v4320_v28 = vpop.f32.mrf.mxu1 }
 0x381   :  { %v4326_v58 = vpop.f32.mrf.mxu1 }
 0x383   :  { %v4333_v37 = vpop.f32.mrf.mxu1 }
 0x384   :  { %4962 = vst [vmem:[#allocation17_spill] sm:$0xff] %v4333_v37  ;;  %v2904_v37 = vsel %vm1664_vm4, 1.0, %v4943_v60 }
 0x385   :  { %v4345_v61 = vpop.f32.mrf.mxu1 }
 0x386   :  { %4964 = vst [vmem:[#allocation12_spill] sm:$0xff] %v4345_v61 }
 0x387   :  { %v4356_v59 = vpop.f32.mrf.mxu1 }
 0x388   :  { %4966 = vst [vmem:[#allocation10_spill] sm:$0xff] %v4356_v59  ;;  %v4400_v59 = vsel %vm1625_vm3, 1.0, %v4943_v60 }
 0x389   :  { %v4373_v16 = vpop.f32.mrf.mxu1 }
 0x38a   :  { %4967 = vst [vmem:[#allocation18_spill] sm:$0xff] %v4373_v16 }
 0x38b   :  { %v3215_v62 = vpop.f32.mrf.mxu1 }
 0x38c   :  { %v2251_v16 = vmul.f32 %v3215_v62, %v2903_v14  ;;  %v4972_v14 = vand.u32 7, %v3659_v19  ;;  %v4978_v19 = vld [vmem:[#allocation11_spill] sm:$0xff] }
 0x38d   :  { %v2186_v61 = vpop.f32.mrf.mxu1  ;;  %v1516_v20 = vand.u32 7, %v4978_v19  ;;  %v5010_v25 = vld [vmem:[#allocation12_spill] sm:$0xff] }
 0x38e   :  { %v2267_v47 = vadd.f32 %v2251_v16, %v2071_v12  ;;  %v2249_v40 = vmul.f32 %v2901_v13, %v2186_v61  ;;  %vm4414_vm0 = vcmp.ne.s32.totalorder %v4972_v14, 7  ;;  %v1860_v16 = vmul.f32 %v4272_v6, %v2891_v10 }
 0x38f   :  { %v3216_v62 = vpop.f32.mrf.mxu1  ;;  %v2905_v54 = vsel %vm4414_vm0, 1.0, %v4943_v60  ;;  %v4979_v10 = vand.u32 7, %v3664_v22  ;;  %v4982_v22 = vand.u32 7, %v3730_v5  ;;  %vm4549_vm12 = vcmp.ne.s32.totalorder %v1516_v20, 0 }
 0x390   :  { %v2265_v13 = vadd.f32 %v2249_v40, %v2069_v44  ;;  %v2252_v51 = vmul.f32 %v3216_v62, %v2904_v37  ;;  %v4426_v29 = vadd.f32 %v4395_v4, %v2267_v47  ;;  %v2075_v47 = vadd.f32 %v4304_v9, %v1860_v16 }
 0x391   :  { %v2189_v61 = vpop.f32.mrf.mxu1  ;;  %vm4448_vm5 = vcmp.ne.s32.totalorder %v4979_v10, 7  ;;  %vm4462_vm6 = vcmp.ne.s32.totalorder %v4982_v22, 7  ;;  %v4994_v44 = vand.u32 7, %v3710_v56  ;;  %v5005_v16 = vmov %v4991_v34 }
 0x392   :  { %v2268_v24 = vadd.f32 %v2252_v51, %v2072_v11  ;;  %v2250_v12 = vmul.f32 %v2902_v57, %v2189_v61  ;;  %v2307_v53 = vsel %vm515_vm2, %v4426_v29, 0.0  ;;  %v4437_v37 = vadd.f32 %v4395_v4, %v2265_v13 }
 0x393   :  { %2308 = vadd.xlane.f32.xlu0 %v2307_v53  ;;  %v3219_v6 = vpop.f32.mrf.mxu1  ;;  %v2906_v5 = vsel %vm4448_vm5, 1.0, %v4943_v60  ;;  %v4988_v51 = vand.u32 7, %v3742_v32  ;;  %v1864_v32 = vmul.f32 %v4280_v31, %v4368_v7  ;;  %v2911_v8 = vsel %vm4462_vm6, 1.0, %v4943_v60 }
 0x394   :  { %v2266_v40 = vadd.f32 %v2250_v12, %v2070_v33  ;;  %v2255_v15 = vmul.f32 %v3219_v6, %v2907_v38  ;;  %v4454_v2 = vadd.f32 %v4395_v4, %v2268_v24  ;;  %v2301_v55 = vsel %vm515_vm2, %v4437_v37, 0.0 }
 0x395   :  { %v2202_v62 = vpop.f32.mrf.mxu1  ;;  %vm4484_vm8 = vcmp.ne.s32.totalorder %v4988_v51, 7  ;;  %v2076_v33 = vadd.f32 %v4308_v46, %v1861_v45  ;;  %v2074_v24 = vadd.f32 %v4310_v1, %v1859_v21  ;;  %v1862_v31 = vmul.f32 %v4371_v30, %v4282_v43 }
 0x396   :  { %v2271_v9 = vadd.f32 %v2255_v15, %v2075_v47  ;;  %v2253_v14 = vmul.f32 %v2905_v54, %v2202_v62  ;;  %v2310_v17 = vsel %vm515_vm2, %v4454_v2, 0.0  ;;  %v4469_v11 = vadd.f32 %v4395_v4, %v2266_v40 }
 0x397   :  { %2302 = vadd.xlane.f32.xlu0 %v2301_v55  ;;  %2311 = vadd.xlane.f32.xlu1 %v2310_v17  ;;  %v3220_v48 = vpop.f32.mrf.mxu1  ;;  %v2909_v7 = vsel %vm4478_vm7, 1.0, %v4943_v60  ;;  %v2912_v10 = vsel %vm4484_vm8, 1.0, %v4943_v60  ;;  %vm4521_vm10 = vcmp.ne.s32.totalorder %v4994_v44, 7  ;;  %v2079_v40 = vadd.f32 %v4312_v39, %v1864_v32  ;;  %v5008_v32 = vld [vmem:[#allocation14_spill] sm:$0xff]  ;;  %v5011_v44 = vld [vmem:[#allocation15_spill] sm:$0xff] }
 0x398   :  { %v2269_v61 = vadd.f32 %v2253_v14, %v2073_v52  ;;  %v2256_v50 = vmul.f32 %v3220_v48, %v2908_v63  ;;  %v4496_v38 = vadd.f32 %v4395_v4, %v2271_v9  ;;  %v2304_v53 = vsel %vm515_vm2, %v4469_v11, 0.0 }
 0x399   :  { %v2205_v12 = vpop.f32.mrf.mxu1  ;;  %v1865_v45 = vmul.f32 %v4284_v26, %v4378_v49  ;;  %v2077_v52 = vadd.f32 %v4316_v23, %v1862_v31  ;;  %v4997_v55 = vand.u32 7, %v4963_v3  ;;  %v1863_v26 = vmul.f32 %v4383_v0, %v4286_v41 }
 0x39a   :  { %v2272_v6 = vadd.f32 %v2256_v50, %v2076_v33  ;;  %v2254_v46 = vmul.f32 %v2906_v5, %v2205_v12  ;;  %v2319_v54 = vsel %vm515_vm2, %v4496_v38, 0.0  ;;  %v4509_v63 = vadd.f32 %v4395_v4, %v2269_v61 }
 0x39b   :  { %2305 = vadd.xlane.f32.xlu1 %v2304_v53  ;;  %2320 = vadd.xlane.f32.xlu0 %v2319_v54  ;;  %v3223_v1 = vpop.f32.mrf.mxu1  ;;  %vm4536_vm11 = vcmp.ne.s32.totalorder %v4997_v55, 7  ;;  %v2910_v3 = vsel %vm4521_vm10, 1.0, %v4943_v60  ;;  %v5002_v17 = vand.u32 7, %v4965_v27  ;;  %v2080_v41 = vadd.f32 %v4320_v28, %v1865_v45  ;;  %v5013_v55 = vld [vmem:[#allocation10_spill] sm:$0xff] }
 0x39c   :  { %v2270_v43 = vadd.f32 %v2254_v46, %v2074_v24  ;;  %v2259_v30 = vmul.f32 %v3223_v1, %v2911_v8  ;;  %v4527_v15 = vadd.f32 %v4395_v4, %v2272_v6  ;;  %v2313_v56 = vsel %vm515_vm2, %v4509_v63, 0.0 }
 0x39d   :  { %v2218_v62 = vpop.f32.mrf.mxu1  ;;  %vm4558_vm13 = vcmp.ne.s32.totalorder %v5002_v17, 7  ;;  %v2078_v36 = vadd.f32 %v4326_v58, %v1863_v26  ;;  %v2915_v27 = vsel %vm4536_vm11, 1.0, %v4943_v60  ;;  %vm4574_vm3 = vcmp.ne.s32.totalorder %v5005_v16, 7 }
 0x39e   :  { %v2275_v39 = vadd.f32 %v2259_v30, %v2079_v40  ;;  %v2257_v57 = vmul.f32 %v2909_v7, %v2218_v62  ;;  %v2322_v9 = vsel %vm515_vm2, %v4527_v15, 0.0  ;;  %v4543_v14 = vadd.f32 %v4395_v4, %v2270_v43  ;;  %v5012_v30 = vld [vmem:[#allocation16_spill] sm:$0xff] }
 0x39f   :  { %2314 = vadd.xlane.f32.xlu0 %v2313_v56  ;;  %2323 = vadd.xlane.f32.xlu1 %v2322_v9  ;;  %v3224_v49 = vpop.f32.mrf.mxu1  ;;  %v1868_v50 = vmul.f32 %v4288_v35, %v4386_v42  ;;  %v1866_v24 = vmul.f32 %v4400_v59, %v5008_v32  ;;  %v2913_v53 = vsel %vm4558_vm13, 1.0, %v4943_v60  ;;  %vm1674_vm4 = vcmp.ne.s32.totalorder %v1516_v20, 7  ;;  %v5009_v42 = vld [vmem:[#allocation17_spill] sm:$0xff] }
 0x3a0   :  { %v2273_v0 = vadd.f32 %v2257_v57, %v2077_v52  ;;  %v2260_v48 = vmul.f32 %v3224_v49, %v2912_v10  ;;  %v4564_v5 = vadd.f32 %v4395_v4, %v2275_v39  ;;  %v2316_v51 = vsel %vm515_vm2, %v4543_v14, 0.0  ;;  %v5014_v57 = vld [vmem:[#allocation18_spill] sm:$0xff] }
 0x3a1   :  { %v2221_v13 = vpop.f32.mrf.mxu1  ;;  %v2898_v35 = vsel %vm4549_vm12, 1.0, %v4943_v60  ;;  %v2083_v59 = vadd.f32 %v5009_v42, %v1868_v50  ;;  %v2081_v54 = vadd.f32 %v5010_v25, %v1866_v24  ;;  %v2916_v1 = vsel %vm4574_vm3, 1.0, %v4943_v60 }
 0x3a2   :  { %v2276_v28 = vadd.f32 %v2260_v48, %v2080_v41  ;;  %v2258_v33 = vmul.f32 %v2910_v3, %v2221_v13  ;;  %v2331_v61 = vsel %vm515_vm2, %v4564_v5, 0.0  ;;  %v4581_v58 = vadd.f32 %v4395_v4, %v2273_v0 }
 0x3a3   :  { %2317 = vadd.xlane.f32.xlu1 %v2316_v51  ;;  %2332 = vadd.xlane.f32.xlu0 %v2331_v61  ;;  %v3227_v12 = vpop.f32.mrf.mxu1  ;;  %v1869_v47 = vmul.f32 %v5011_v44, %v2900_v18  ;;  %v2914_v43 = vsel %vm1674_vm4, 1.0, %v4943_v60  ;;  %v1867_v45 = vmul.f32 %v2898_v35, %v5012_v30  ;;  %vm2714_vm0 = vcmask 326912  }
 0x3a4   :  { %v2274_v8 = vadd.f32 %v2258_v33, %v2078_v36  ;;  %v2263_v6 = vmul.f32 %v3227_v12, %v2915_v27  ;;  %v4594_v46 = vadd.f32 %v4395_v4, %v2276_v28  ;;  %v2325_v10 = vsel %vm515_vm2, %v4581_v58, 0.0 }
 0x3a5   :  { %v2234_v31 = vpop.f32.mrf.mxu1  ;;  %v2084_v22 = vadd.f32 %v5013_v55, %v1869_v47  ;;  %v2082_v9 = vadd.f32 %v5014_v57, %v1867_v45  ;;  %vm2728_vm5 = vcmask 458112   ;;  %vm2735_vm6 = vcmask 523712  }
 0x3a6   :  { %v2261_v7 = vmul.f32 %v2913_v53, %v2234_v31  ;;  %v2334_v19 = vsel %vm515_vm2, %v4594_v46, 0.0  ;;  %v4611_v20 = vadd.f32 %v4395_v4, %v2274_v8  ;;  %v2279_v52 = vadd.f32 %v2263_v6, %v2083_v59 }
 0x3a7   :  { %2326 = vadd.xlane.f32.xlu0 %v2325_v10  ;;  %2335 = vadd.xlane.f32.xlu1 %v2334_v19  ;;  %v3228_v40 = vpop.f32.mrf.mxu1  ;;  %vm2742_vm7 = vcmask 589312   ;;  %vm2749_vm8 = vcmask 654912   ;;  %vm2763_vm10 = vcmask 786112   ;;  %vm2770_vm11 = vcmask 851712  }
 0x3a8   :  { %v2277_v62 = vadd.f32 %v2261_v7, %v2081_v54  ;;  %v2264_v56 = vmul.f32 %v3228_v40, %v2916_v1  ;;  %v2328_v23 = vsel %vm515_vm2, %v4611_v20, 0.0  ;;  %v4626_v21 = vadd.f32 %v4395_v4, %v2279_v52 }
 0x3a9   :  { %v2237_v39 = vpop.f32.mrf.mxu1  ;;  %vm2777_vm12 = vcmask 917312   ;;  %vm2784_vm13 = vcmask 982912   ;;  %vm2791_vm3 = vcmask 1048512  }
 0x3aa   :  { %v2262_v26 = vmul.f32 %v2914_v43, %v2237_v39  ;;  %v4621_v49 = vadd.f32 %v4395_v4, %v2277_v62  ;;  %v2280_v3 = vadd.f32 %v2264_v56, %v2084_v22  ;;  %v2343_v0 = vsel %vm515_vm2, %v4626_v21, 0.0 }
 0x3ab   :  { %2329 = vadd.xlane.f32.xlu1 %v2328_v23 }
 0x3ac   :  { %v2278_v60 = vadd.f32 %v2262_v26, %v2082_v9  ;;  %v2337_v17 = vsel %vm515_vm2, %v4621_v49, 0.0  ;;  %v4636_v36 = vadd.f32 %v4395_v4, %v2280_v3 }
 0x3ad   :  { %2338 = vadd.xlane.f32.xlu0 %v2337_v17 }
 0x3ae   :  { %v4629_v41 = vadd.f32 %v4395_v4, %v2278_v60  ;;  %v2346_v13 = vsel %vm515_vm2, %v4636_v36, 0.0 }
 0x3b0   :  { %v2340_v48 = vsel %vm515_vm2, %v4629_v41, 0.0 }
 0x3b1   :  { %2344 = vadd.xlane.f32.xlu0 %v2343_v0  ;;  %2341 = vadd.xlane.f32.xlu1 %v2340_v48 }
 0x3b5   :  { %2347 = vadd.xlane.f32.xlu1 %v2346_v13 }
 0x41c   :  { %v2309_v51 = vpop.xlane.xlu0 %2308 }
 0x41d   :  { %v2351_v27 = vmul.f32 0.03125, %v2309_v51 }
 0x41f   :  { %v4641_v16 = vsub.f32 %v4426_v29, %v2351_v27 }
 0x420   :  { %v2303_v34 = vpop.xlane.xlu0 %2302  ;;  %v2312_v28 = vpop.xlane.xlu1 %2311 }
 0x421   :  { %v2349_v33 = vmul.f32 0.03125, %v2303_v34  ;;  %v2352_v61 = vmul.f32 0.03125, %v2312_v28  ;;  %v2383_v50 = vmul.f32 %v4641_v16, %v4641_v16 }
 0x423   :  { %v4646_v4 = vsub.f32 %v4437_v37, %v2349_v33  ;;  %v4649_v32 = vsub.f32 %v4454_v2, %v2352_v61  ;;  %v2403_v24 = vsel %vm515_vm2, %v2383_v50, 0.0 }
 0x424   :  { %v2306_v18 = vpop.xlane.xlu1 %2305  ;;  %v2321_v12 = vpop.xlane.xlu0 %2320  ;;  %2404 = vadd.xlane.f32.xlu0 %v2403_v24 }
 0x425   :  { %v2350_v29 = vmul.f32 0.03125, %v2306_v18  ;;  %v2355_v53 = vmul.f32 0.03125, %v2321_v12  ;;  %v2381_v8 = vmul.f32 %v4646_v4, %v4646_v4  ;;  %v2384_v6 = vmul.f32 %v4649_v32, %v4649_v32 }
 0x427   :  { %v4657_v35 = vsub.f32 %v4469_v11, %v2350_v29  ;;  %v4660_v37 = vsub.f32 %v4496_v38, %v2355_v53  ;;  %v2397_v2 = vsel %vm515_vm2, %v2381_v8, 0.0  ;;  %v2406_v42 = vsel %vm515_vm2, %v2384_v6, 0.0 }
 0x428   :  { %v2315_v59 = vpop.xlane.xlu0 %2314  ;;  %v2324_v25 = vpop.xlane.xlu1 %2323  ;;  %2398 = vadd.xlane.f32.xlu0 %v2397_v2  ;;  %2407 = vadd.xlane.f32.xlu1 %v2406_v42 }
 0x429   :  { %v2353_v54 = vmul.f32 0.03125, %v2315_v59  ;;  %v2356_v31 = vmul.f32 0.03125, %v2324_v25  ;;  %v2387_v1 = vmul.f32 %v4660_v37, %v4660_v37  ;;  %v2382_v11 = vmul.f32 %v4657_v35, %v4657_v35 }
 0x42b   :  { %v4669_v7 = vsub.f32 %v4509_v63, %v2353_v54  ;;  %v4672_v38 = vsub.f32 %v4527_v15, %v2356_v31  ;;  %v2415_v10 = vsel %vm515_vm2, %v2387_v1, 0.0  ;;  %v2400_v19 = vsel %vm515_vm2, %v2382_v11, 0.0 }
 0x42c   :  { %v2318_v44 = vpop.xlane.xlu1 %2317  ;;  %v2333_v47 = vpop.xlane.xlu0 %2332  ;;  %2416 = vadd.xlane.f32.xlu0 %v2415_v10  ;;  %2401 = vadd.xlane.f32.xlu1 %v2400_v19 }
 0x42d   :  { %v2354_v40 = vmul.f32 0.03125, %v2318_v44  ;;  %v2359_v43 = vmul.f32 0.03125, %v2333_v47  ;;  %v2385_v30 = vmul.f32 %v4669_v7, %v4669_v7  ;;  %v2388_v63 = vmul.f32 %v4672_v38, %v4672_v38 }
 0x42f   :  { %v4681_v45 = vsub.f32 %v4543_v14, %v2354_v40  ;;  %v4684_v15 = vsub.f32 %v4564_v5, %v2359_v43  ;;  %v2409_v52 = vsel %vm515_vm2, %v2385_v30, 0.0  ;;  %v2418_v62 = vsel %vm515_vm2, %v2388_v63, 0.0 }
 0x430   :  { %v2327_v56 = vpop.xlane.xlu0 %2326  ;;  %v2336_v55 = vpop.xlane.xlu1 %2335  ;;  %2410 = vadd.xlane.f32.xlu0 %v2409_v52  ;;  %2419 = vadd.xlane.f32.xlu1 %v2418_v62 }
 0x431   :  { %v2357_v22 = vmul.f32 0.03125, %v2327_v56  ;;  %v2360_v39 = vmul.f32 0.03125, %v2336_v55  ;;  %v2391_v57 = vmul.f32 %v4684_v15, %v4684_v15  ;;  %v2386_v14 = vmul.f32 %v4681_v45, %v4681_v45 }
 0x433   :  { %v4693_v9 = vsub.f32 %v4581_v58, %v2357_v22  ;;  %v4696_v5 = vsub.f32 %v4594_v46, %v2360_v39  ;;  %v2427_v26 = vsel %vm515_vm2, %v2391_v57, 0.0  ;;  %v2412_v23 = vsel %vm515_vm2, %v2386_v14, 0.0  ;;  %v5015_v39 = vld [vmem:[#allocation9_spill] sm:$0xff] }
 0x434   :  { %v2330_v3 = vpop.xlane.xlu1 %2329  ;;  %2428 = vadd.xlane.f32.xlu0 %v2427_v26  ;;  %2413 = vadd.xlane.f32.xlu1 %v2412_v23  ;;  %v2511_v57 = vsub.s32 4, %v5015_v39  ;;  %v2531_v23 = vsub.s32 5, %v5015_v39 }
 0x435   :  { %v2358_v60 = vmul.f32 0.03125, %v2330_v3  ;;  %v2389_v17 = vmul.f32 %v4693_v9, %v4693_v9  ;;  %v2392_v0 = vmul.f32 %v4696_v5, %v4696_v5 }
 0x436   :  { %v2339_v48 = vpop.xlane.xlu0 %2338 }
 0x437   :  { %v4705_v58 = vsub.f32 %v4611_v20, %v2358_v60  ;;  %v2361_v46 = vmul.f32 0.03125, %v2339_v48  ;;  %v2421_v13 = vsel %vm515_vm2, %v2389_v17, 0.0  ;;  %v2430_v51 = vsel %vm515_vm2, %v2392_v0, 0.0  ;;  %v5016_v48 = vld [vmem:[#allocation19_spill] sm:$0xff] }
 0x438   :  { %2422 = vadd.xlane.f32.xlu0 %v2421_v13  ;;  %2431 = vadd.xlane.f32.xlu1 %v2430_v51  ;;  %v2567_v51 = vsub.s32 6, %v5015_v39 }
 0x439   :  { %v4710_v27 = vsub.f32 %v4621_v49, %v2361_v46  ;;  %v2390_v34 = vmul.f32 %v4705_v58, %v4705_v58  ;;  %v4739_v46 = vrot.slane %v5016_v48, %v2511_v57 }
 0x43a   :  { %v2345_v28 = vpop.xlane.xlu0 %2344  ;;  %v2342_v33 = vpop.xlane.xlu1 %2341 }
 0x43b   :  { %v2363_v61 = vmul.f32 0.03125, %v2345_v28  ;;  %v2362_v50 = vmul.f32 0.03125, %v2342_v33  ;;  %v2424_v20 = vsel %vm515_vm2, %v2390_v34, 0.0  ;;  %v2393_v24 = vmul.f32 %v4710_v27, %v4710_v27 }
 0x43c   :  { %2425 = vadd.xlane.f32.xlu1 %v2424_v20 }
 0x43d   :  { %v4718_v18 = vsub.f32 %v4626_v21, %v2363_v61  ;;  %v4721_v12 = vsub.f32 %v4629_v41, %v2362_v50  ;;  %v2433_v49 = vsel %vm515_vm2, %v2393_v24, 0.0  ;;  %v4744_v61 = vrot.slane %v5016_v48, %v2531_v23 }
 0x43e   :  { %2434 = vadd.xlane.f32.xlu0 %v2433_v49  ;;  %v2348_v29 = vpop.xlane.xlu1 %2347 }
 0x43f   :  { %v2364_v53 = vmul.f32 0.03125, %v2348_v29  ;;  %v2395_v8 = vmul.f32 %v4718_v18, %v4718_v18  ;;  %v2394_v6 = vmul.f32 %v4721_v12, %v4721_v12 }
 0x441   :  { %v4729_v2 = vsub.f32 %v4636_v36, %v2364_v53  ;;  %v2439_v21 = vsel %vm515_vm2, %v2395_v8, 0.0  ;;  %v2436_v42 = vsel %vm515_vm2, %v2394_v6, 0.0  ;;  %v4748_v8 = vrot.slane %v5016_v48, %v2567_v51 }
 0x442   :  { %2440 = vadd.xlane.f32.xlu0 %v2439_v21  ;;  %2437 = vadd.xlane.f32.xlu1 %v2436_v42 }
 0x443   :  { %v2396_v41 = vmul.f32 %v4729_v2, %v4729_v2 }
 0x445   :  { %v2442_v59 = vsel %vm515_vm2, %v2396_v41, 0.0 }
 0x446   :  { %2443 = vadd.xlane.f32.xlu1 %v2442_v59 }
 0x4ad   :  { %v2405_v25 = vpop.xlane.xlu0 %2404 }
 0x4ae   :  { %v2447_v54 = vmul.f32 0.03125, %v2405_v25 }
 0x4b0   :  { %v2463_v31 = vadd.f32 1e-05, %v2447_v54 }
 0x4b1   :  { %v2399_v1 = vpop.xlane.xlu0 %2398  ;;  %v2408_v11 = vpop.xlane.xlu1 %2407 }
 0x4b2   :  { %3285 = vrsqrt.f32 %v2463_v31  ;;  %v2445_v36 = vmul.f32 0.03125, %v2399_v1  ;;  %v2448_v10 = vmul.f32 0.03125, %v2408_v11 }
 0x4b4   :  { %v2461_v19 = vadd.f32 1e-05, %v2445_v36  ;;  %v2464_v44 = vadd.f32 1e-05, %v2448_v10 }
 0x4b5   :  { %v2417_v47 = vpop.xlane.xlu0 %2416  ;;  %v2402_v40 = vpop.xlane.xlu1 %2401 }
 0x4b6   :  { %3287 = vrsqrt.f32 %v2461_v19  ;;  %v2451_v43 = vmul.f32 0.03125, %v2417_v47  ;;  %v2446_v30 = vmul.f32 0.03125, %v2402_v40 }
 0x4b7   :  { %3289 = vrsqrt.f32 %v2464_v44 }
 0x4b8   :  { %v2467_v63 = vadd.f32 1e-05, %v2451_v43  ;;  %v2462_v52 = vadd.f32 1e-05, %v2446_v30 }
 0x4b9   :  { %v2411_v62 = vpop.xlane.xlu0 %2410  ;;  %v2420_v56 = vpop.xlane.xlu1 %2419 }
 0x4ba   :  { %3291 = vrsqrt.f32 %v2467_v63  ;;  %v2449_v55 = vmul.f32 0.03125, %v2411_v62  ;;  %v2452_v22 = vmul.f32 0.03125, %v2420_v56 }
 0x4bb   :  { %3293 = vrsqrt.f32 %v2462_v52 }
 0x4bc   :  { %v2465_v14 = vadd.f32 1e-05, %v2449_v55  ;;  %v2468_v26 = vadd.f32 1e-05, %v2452_v22 }
 0x4bd   :  { %v2429_v3 = vpop.xlane.xlu0 %2428  ;;  %v2414_v60 = vpop.xlane.xlu1 %2413 }
 0x4be   :  { %3295 = vrsqrt.f32 %v2465_v14  ;;  %v2455_v17 = vmul.f32 0.03125, %v2429_v3  ;;  %v2450_v0 = vmul.f32 0.03125, %v2414_v60 }
 0x4bf   :  { %v3286_v13 = vpop.eup %3285  ;;  %3297 = vrsqrt.f32 %v2468_v26 }
 0x4c0   :  { %v2471_v34 = vadd.f32 1e-05, %v2455_v17  ;;  %v2466_v28 = vadd.f32 1e-05, %v2450_v0  ;;  %v2495_v33 = vmul.f32 %v3286_v13, %v4641_v16 }
 0x4c1   :  { %v2423_v50 = vpop.xlane.xlu0 %2422  ;;  %v2432_v20 = vpop.xlane.xlu1 %2431 }
 0x4c2   :  { %3299 = vrsqrt.f32 %v2471_v34  ;;  %v2453_v24 = vmul.f32 0.03125, %v2423_v50  ;;  %v2456_v49 = vmul.f32 0.03125, %v2432_v20  ;;  %v2515_v29 = vmul.f32 %v4739_v46, %v2495_v33 }
 0x4c3   :  { %v3288_v53 = vpop.eup %3287  ;;  %3301 = vrsqrt.f32 %v2466_v28 }
 0x4c4   :  { %v3290_v6 = vpop.eup %3289  ;;  %v2469_v21 = vadd.f32 1e-05, %v2453_v24  ;;  %v2472_v42 = vadd.f32 1e-05, %v2456_v49  ;;  %v2535_v16 = vadd.f32 %v4744_v61, %v2515_v29  ;;  %v2493_v41 = vmul.f32 %v3288_v53, %v4646_v4 }
 0x4c5   :  { %v2426_v59 = vpop.xlane.xlu1 %2425  ;;  %v2496_v25 = vmul.f32 %v3290_v6, %v4649_v32 }
 0x4c6   :  { %3303 = vrsqrt.f32 %v2469_v21  ;;  %v2454_v54 = vmul.f32 0.03125, %v2426_v59  ;;  %v2551_v31 = vmax.f32 %v2535_v16, 0.0  ;;  %v2513_v1 = vmul.f32 %v4739_v46, %v2493_v41 }
 0x4c7   :  { %v3292_v11 = vpop.eup %3291  ;;  %3305 = vrsqrt.f32 %v2472_v42  ;;  %v2435_v36 = vpop.xlane.xlu0 %2434  ;;  %v2516_v10 = vmul.f32 %v4739_v46, %v2496_v25 }
 0x4c8   :  { %v3294_v19 = vpop.eup %3293  ;;  %v2470_v44 = vadd.f32 1e-05, %v2454_v54  ;;  %v2457_v47 = vmul.f32 0.03125, %v2435_v36  ;;  %v2571_v40 = vmul.f32 %v4748_v8, %v2551_v31  ;;  %v2533_v4 = vadd.f32 %v4744_v61, %v2513_v1 }
 0x4c9   :  { %v2536_v43 = vadd.f32 %v4744_v61, %v2516_v10  ;;  %v2499_v32 = vmul.f32 %v3292_v11, %v4660_v37  ;;  %v2494_v30 = vmul.f32 %v3294_v19, %v4657_v35 }
 0x4ca   :  { %3307 = vrsqrt.f32 %v2470_v44  ;;  %v2473_v63 = vadd.f32 1e-05, %v2457_v47  ;;  %v2591_v52 = vsel %vm515_vm2, %v2571_v40, 0.0  ;;  %v2549_v62 = vmax.f32 %v2533_v4, 0.0 }
 0x4cb   :  { %v3296_v56 = vpop.eup %3295  ;;  %2592 = vadd.xlane.f32.xlu0 %v2591_v52  ;;  %v2441_v55 = vpop.xlane.xlu0 %2440  ;;  %v2552_v57 = vmax.f32 %v2536_v43, 0.0  ;;  %v2519_v14 = vmul.f32 %v4739_v46, %v2499_v32  ;;  %v2514_v26 = vmul.f32 %v4739_v46, %v2494_v30 }
 0x4cc   :  { %v2438_v22 = vpop.xlane.xlu1 %2437  ;;  %v3298_v23 = vpop.eup %3297  ;;  %3309 = vrsqrt.f32 %v2473_v63  ;;  %v2459_v3 = vmul.f32 0.03125, %v2441_v55  ;;  %v2569_v35 = vmul.f32 %v4748_v8, %v2549_v62  ;;  %v2497_v48 = vmul.f32 %v3296_v56, %v4669_v7 }
 0x4cd   :  { %v2458_v37 = vmul.f32 0.03125, %v2438_v22  ;;  %v2572_v60 = vmul.f32 %v4748_v8, %v2552_v57  ;;  %v2539_v17 = vadd.f32 %v4744_v61, %v2519_v14  ;;  %v2534_v0 = vadd.f32 %v4744_v61, %v2514_v26 }
 0x4ce   :  { %v2475_v13 = vadd.f32 1e-05, %v2459_v3  ;;  %v2585_v34 = vsel %vm515_vm2, %v2569_v35, 0.0  ;;  %v2500_v28 = vmul.f32 %v3298_v23, %v4672_v38  ;;  %v2517_v29 = vmul.f32 %v4739_v46, %v2497_v48 }
 0x4cf   :  { %v2474_v51 = vadd.f32 1e-05, %v2458_v37  ;;  %v3300_v33 = vpop.eup %3299  ;;  %2586 = vadd.xlane.f32.xlu0 %v2585_v34  ;;  %v2594_v50 = vsel %vm515_vm2, %v2572_v60, 0.0  ;;  %v2555_v24 = vmax.f32 %v2539_v17, 0.0  ;;  %v2550_v49 = vmax.f32 %v2534_v0, 0.0 }
 0x4d0   :  { %v2444_v20 = vpop.xlane.xlu1 %2443  ;;  %v3302_v53 = vpop.eup %3301  ;;  %3311 = vrsqrt.f32 %v2475_v13  ;;  %2595 = vadd.xlane.f32.xlu1 %v2594_v50  ;;  %v2520_v7 = vmul.f32 %v4739_v46, %v2500_v28  ;;  %v2503_v21 = vmul.f32 %v3300_v33, %v4684_v15  ;;  %v2537_v16 = vadd.f32 %v4744_v61, %v2517_v29 }
 0x4d1   :  { %v2460_v6 = vmul.f32 0.03125, %v2444_v20  ;;  %3313 = vrsqrt.f32 %v2474_v51  ;;  %v2575_v38 = vmul.f32 %v4748_v8, %v2555_v24  ;;  %v2570_v42 = vmul.f32 %v4748_v8, %v2550_v49 }
 0x4d2   :  { %v2540_v59 = vadd.f32 %v4744_v61, %v2520_v7  ;;  %v2523_v25 = vmul.f32 %v4739_v46, %v2503_v21  ;;  %v2498_v54 = vmul.f32 %v3302_v53, %v4681_v45  ;;  %v2553_v15 = vmax.f32 %v2537_v16, 0.0 }
 0x4d3   :  { %v2476_v41 = vadd.f32 1e-05, %v2460_v6  ;;  %v3304_v31 = vpop.eup %3303  ;;  %v2603_v1 = vsel %vm515_vm2, %v2575_v38, 0.0  ;;  %v2588_v11 = vsel %vm515_vm2, %v2570_v42, 0.0 }
 0x4d4   :  { %v3306_v36 = vpop.eup %3305  ;;  %2604 = vadd.xlane.f32.xlu0 %v2603_v1  ;;  %2589 = vadd.xlane.f32.xlu1 %v2588_v11  ;;  %v2556_v10 = vmax.f32 %v2540_v59, 0.0  ;;  %v2543_v19 = vadd.f32 %v4744_v61, %v2523_v25  ;;  %v2518_v44 = vmul.f32 %v4739_v46, %v2498_v54  ;;  %v2573_v47 = vmul.f32 %v4748_v8, %v2553_v15 }
 0x4d5   :  { %3315 = vrsqrt.f32 %v2476_v41  ;;  %v2501_v40 = vmul.f32 %v3304_v31, %v4693_v9  ;;  %v2504_v45 = vmul.f32 %v3306_v36, %v4696_v5 }
 0x4d6   :  { %v2576_v4 = vmul.f32 %v4748_v8, %v2556_v10  ;;  %v2559_v43 = vmax.f32 %v2543_v19, 0.0  ;;  %v2538_v32 = vadd.f32 %v4744_v61, %v2518_v44  ;;  %v2597_v63 = vsel %vm515_vm2, %v2573_v47, 0.0 }
 0x4d7   :  { %v3308_v30 = vpop.eup %3307  ;;  %v2521_v52 = vmul.f32 %v4739_v46, %v2501_v40  ;;  %v2524_v62 = vmul.f32 %v4739_v46, %v2504_v45  ;;  %v5017_v19 = vlaneseq }
 0x4d8   :  { %2598 = vadd.xlane.f32.xlu0 %v2597_v63  ;;  %v2606_v56 = vsel %vm515_vm2, %v2576_v4, 0.0  ;;  %v2579_v55 = vmul.f32 %v4748_v8, %v2559_v43  ;;  %v2554_v9 = vmax.f32 %v2538_v32, 0.0  ;;  %v2502_v5 = vmul.f32 %v3308_v30, %v4705_v58 }
 0x4d9   :  { %v3310_v22 = vpop.eup %3309  ;;  %2607 = vadd.xlane.f32.xlu1 %v2606_v56  ;;  %v2541_v57 = vadd.f32 %v4744_v61, %v2521_v52  ;;  %v2544_v14 = vadd.f32 %v4744_v61, %v2524_v62  ;;  %v4829_v44 = vand.u32 127, %v5017_v19 }
 0x4da   :  { %v2615_v26 = vsel %vm515_vm2, %v2579_v55, 0.0  ;;  %v2574_v23 = vmul.f32 %v4748_v8, %v2554_v9  ;;  %v2522_v3 = vmul.f32 %v4739_v46, %v2502_v5  ;;  %v2505_v37 = vmul.f32 %v3310_v22, %v4710_v27 }
 0x4db   :  { %v2557_v35 = vmax.f32 %v2541_v57, 0.0  ;;  %v2560_v60 = vmax.f32 %v2544_v14, 0.0  ;;  %v2688_v4 = vadd.s32 4294967288, %v4829_v44  ;;  %v2702_v32 = vadd.s32 4294967272, %v4829_v44 }
 0x4dc   :  { %2616 = vadd.xlane.f32.xlu0 %v2615_v26  ;;  %v2600_v17 = vsel %vm515_vm2, %v2574_v23, 0.0  ;;  %v2542_v58 = vadd.f32 %v4744_v61, %v2522_v3  ;;  %v2525_v0 = vmul.f32 %v4739_v46, %v2505_v37  ;;  %v2686_v52 = vsub.s32 %v4829_v44, %v5015_v39 }
 0x4dd   :  { %v3312_v48 = vpop.eup %3311  ;;  %2601 = vadd.xlane.f32.xlu1 %v2600_v17  ;;  %v2577_v13 = vmul.f32 %v4748_v8, %v2557_v35  ;;  %v2580_v51 = vmul.f32 %v4748_v8, %v2560_v60  ;;  %v2691_v56 = vsub.s32 %v2688_v4, %v5015_v39  ;;  %v2709_v5 = vadd.s32 4294967264, %v4829_v44 }
 0x4de   :  { %v3314_v34 = vpop.eup %3313  ;;  %v2558_v28 = vmax.f32 %v2542_v58, 0.0  ;;  %v2545_v33 = vadd.f32 %v4744_v61, %v2525_v0  ;;  %v2507_v27 = vmul.f32 %v3312_v48, %v4718_v18  ;;  %v2705_v26 = vsub.s32 %v2702_v32, %v5015_v39 }
 0x4df   :  { %v2609_v50 = vsel %vm515_vm2, %v2577_v13, 0.0  ;;  %v2618_v20 = vsel %vm515_vm2, %v2580_v51, 0.0  ;;  %v2506_v24 = vmul.f32 %v3314_v34, %v4721_v12  ;;  %v2723_v23 = vadd.s32 4294967248, %v4829_v44 }
 0x4e0   :  { %2610 = vadd.xlane.f32.xlu0 %v2609_v50  ;;  %v2578_v49 = vmul.f32 %v4748_v8, %v2558_v28  ;;  %v2561_v29 = vmax.f32 %v2545_v33, 0.0  ;;  %v2527_v53 = vmul.f32 %v4739_v46, %v2507_v27  ;;  %v2716_v58 = vadd.s32 4294967256, %v4829_v44 }
 0x4e1   :  { %2619 = vadd.xlane.f32.xlu1 %v2618_v20  ;;  %v2526_v7 = vmul.f32 %v4739_v46, %v2506_v24  ;;  %v2712_v48 = vsub.s32 %v2709_v5, %v5015_v39  ;;  %v2730_v13 = vadd.s32 4294967240, %v4829_v44  ;;  %v2726_v50 = vsub.s32 %v2723_v23, %v5015_v39 }
 0x4e2   :  { %v3316_v6 = vpop.eup %3315  ;;  %v2612_v21 = vsel %vm515_vm2, %v2578_v49, 0.0  ;;  %v2581_v18 = vmul.f32 %v4748_v8, %v2561_v29  ;;  %v2547_v38 = vadd.f32 %v4744_v61, %v2527_v53  ;;  %v2719_v24 = vsub.s32 %v2716_v58, %v5015_v39 }
 0x4e3   :  { %v2508_v42 = vmul.f32 %v3316_v6, %v4729_v2  ;;  %v2546_v12 = vadd.f32 %v4744_v61, %v2526_v7  ;;  %v2737_v7 = vadd.s32 4294967232, %v4829_v44 }
 0x4e4   :  { %v2621_v16 = vsel %vm515_vm2, %v2581_v18, 0.0  ;;  %v2563_v41 = vmax.f32 %v2547_v38, 0.0  ;;  %v2733_v38 = vsub.s32 %v2730_v13, %v5015_v39 }
 0x4e5   :  { %v2528_v59 = vmul.f32 %v4739_v46, %v2508_v42  ;;  %2613 = vadd.xlane.f32.xlu1 %v2612_v21  ;;  %2622 = vadd.xlane.f32.xlu0 %v2621_v16  ;;  %v2562_v25 = vmax.f32 %v2546_v12, 0.0  ;;  %v2751_v12 = vadd.s32 4294967216, %v4829_v44 }
 0x4e6   :  { %v2583_v54 = vmul.f32 %v4748_v8, %v2563_v41 }
 0x4e7   :  { %v2548_v31 = vadd.f32 %v4744_v61, %v2528_v59  ;;  %v2582_v1 = vmul.f32 %v4748_v8, %v2562_v25  ;;  %v4834_v61 = vstv %s4897_s5  ;;  %v2758_v59 = vadd.s32 4294967208, %v4829_v44  ;;  %s3367_s5 = smov [#allocation6]  }
 0x4e8   :  { %v2627_v11 = vsel %vm515_vm2, %v2583_v54, 0.0  ;;  %s2801_s10 = sshll.u32 %s3367_s5, 4  ;;  %s2802_s10 = int_to_ptr.vmem [resolvable:$true] %s2801_s10 }
 0x4e9   :  { %v2564_v15 = vmax.f32 %v2548_v31, 0.0  ;;  %2628 = vadd.xlane.f32.xlu0 %v2627_v11  ;;  %v2624_v2 = vsel %vm515_vm2, %v2582_v1, 0.0  ;;  %v2744_v31 = vadd.s32 4294967224, %v4829_v44  ;;  %s3338_s11 = scalar_lea.vmem %s2802_s10, 16  ;;  %s3342_s12 = scalar_lea.vmem %s2802_s10, 32 }
 0x4ea   :  { %2625 = vadd.xlane.f32.xlu1 %v2624_v2  ;;  %v2765_v2 = vadd.s32 4294967200, %v4829_v44  ;;  %p3339_p5 = scmp.ne.s32.totalorder %s2802_s10, %s3338_s11  ;;  %p3343_p6 = scmp.lt.s32.totalorder %s2802_s10, %s2802_s10 }
 0x4eb   :  { %v2584_v36 = vmul.f32 %v4748_v8, %v2564_v15  ;;  %v2695_v8 = vadd.s32 4294967280, %v4829_v44  ;;  %v2740_v15 = vsub.s32 %v2737_v7, %v5015_v39  ;;  %p3344_p7 = scmp.lt.s32.totalorder %s3342_s12, %s3338_s11 }
 0x4ed   :  { %v2630_v46 = vsel %vm515_vm2, %v2584_v36, 0.0  ;;  %v2698_v22 = vsub.s32 %v2695_v8, %v5015_v39  ;;  %vm2693_vm2 = vcmask 130112   ;;  %p3345_p8 = por %p3344_p7, %p3343_p6 }
 0x4ee   :  { %2631 = vadd.xlane.f32.xlu1 %v2630_v46 }
 0x4ef   :  { %p3346_p9 = pnand %p3345_p8, %p3339_p5 }
 0x554   :  { %v2593_v10 = vpop.xlane.xlu0 %2592 }
 0x555   :  { %v2636_v43 = vadd.f32 %v4834_v61, %v2593_v10 }
 0x557   :  { %v2652_v57 = vmax.f32 %v2636_v43, 0.0  ;;  %v2747_v43 = vsub.s32 %v2744_v31, %v5015_v39 }
 0x558   :  { %v2587_v47 = vpop.xlane.xlu0 %2586 }
 0x559   :  { %v2596_v40 = vpop.xlane.xlu1 %2595  ;;  %v2634_v45 = vadd.f32 %v4834_v61, %v2587_v47  ;;  %v2699_v51 = vrot.slane %v2652_v57, %v2698_v22  ;;  %v2754_v47 = vsub.s32 %v2751_v12, %v5015_v39  ;;  %v2768_v22 = vsub.s32 %v2765_v2, %v5015_v39 }
 0x55a   :  { %v2637_v9 = vadd.f32 %v4834_v61, %v2596_v40 }
 0x55b   :  { %v2650_v62 = vmax.f32 %v2634_v45, 0.0  ;;  %v2761_v45 = vsub.s32 %v2758_v59, %v5015_v39 }
 0x55c   :  { %v2653_v0 = vmax.f32 %v2637_v9, 0.0 }
 0x55d   :  { %v2605_v30 = vpop.xlane.xlu0 %2604  ;;  %v2590_v63 = vpop.xlane.xlu1 %2589  ;;  %v2687_v37 = vrot.slane %v2650_v62, %v2686_v52 }
 0x55e   :  { %v2635_v55 = vadd.f32 %v4834_v61, %v2590_v63  ;;  %v2640_v34 = vadd.f32 %v4834_v61, %v2605_v30  ;;  %v2706_v29 = vrot.slane %v2653_v0, %v2705_v26  ;;  %v2779_v63 = vadd.s32 4294967184, %v4829_v44 }
 0x560   :  { %v2651_v14 = vmax.f32 %v2635_v55, 0.0  ;;  %v2656_v21 = vmax.f32 %v2640_v34, 0.0  ;;  %v2772_v55 = vadd.s32 4294967192, %v4829_v44 }
 0x561   :  { %v2599_v3 = vpop.xlane.xlu0 %2598 }
 0x562   :  { %v2692_v35 = vrot.slane %v2651_v14, %v2691_v56  ;;  %v2638_v60 = vadd.f32 %v4834_v61, %v2599_v3  ;;  %v2608_v17 = vpop.xlane.xlu1 %2607  ;;  %v2727_v36 = vrot.slane %v2656_v21, %v2726_v50 }
 0x563   :  { %v2641_v53 = vadd.f32 %v4834_v61, %v2608_v17  ;;  %v2775_v17 = vsub.s32 %v2772_v55, %v5015_v39 }
 0x564   :  { %v2694_v28 = vsel %vm2693_vm2, %v2692_v35, %v2687_v37  ;;  %v2654_v33 = vmax.f32 %v2638_v60, 0.0  ;;  %v2782_v35 = vsub.s32 %v2779_v63, %v5015_v39 }
 0x565   :  { %v2617_v27 = vpop.xlane.xlu0 %2616  ;;  %v2701_v20 = vsel %vm2700_vm14, %v2699_v51, %v2694_v28  ;;  %v2657_v1 = vmax.f32 %v2641_v53, 0.0  ;;  %v2786_v51 = vadd.s32 4294967176, %v4829_v44 }
 0x566   :  { %v2602_v49 = vpop.xlane.xlu1 %2601  ;;  %v2713_v18 = vrot.slane %v2654_v33, %v2712_v48  ;;  %v2708_v42 = vsel %vm2707_vm15, %v2706_v29, %v2701_v20  ;;  %v2644_v10 = vadd.f32 %v4834_v61, %v2617_v27 }
 0x567   :  { %v2639_v6 = vadd.f32 %v4834_v61, %v2602_v49  ;;  %v2734_v52 = vrot.slane %v2657_v1, %v2733_v38  ;;  %v2789_v53 = vsub.s32 %v2786_v51, %v5015_v39 }
 0x568   :  { %v2715_v46 = vsel %vm2714_vm0, %v2713_v18, %v2708_v42  ;;  %v2660_v9 = vmax.f32 %v2644_v10, 0.0 }
 0x569   :  { %v2655_v16 = vmax.f32 %v2639_v6, 0.0  ;;  %v2611_v41 = vpop.xlane.xlu0 %2610 }
 0x56a   :  { %v2642_v25 = vadd.f32 %v4834_v61, %v2611_v41  ;;  %v2620_v54 = vpop.xlane.xlu1 %2619  ;;  %v2755_v0 = vrot.slane %v2660_v9, %v2754_v47 }
 0x56b   :  { %v2720_v11 = vrot.slane %v2655_v16, %v2719_v24  ;;  %v2645_v4 = vadd.f32 %v4834_v61, %v2620_v54 }
 0x56c   :  { %v2658_v19 = vmax.f32 %v2642_v25, 0.0 }
 0x56d   :  { %v2722_v40 = vsel %vm2721_vm1, %v2720_v11, %v2715_v46  ;;  %v2661_v14 = vmax.f32 %v2645_v4, 0.0 }
 0x56e   :  { %v2729_v8 = vsel %vm2728_vm5, %v2727_v36, %v2722_v40  ;;  %v2614_v32 = vpop.xlane.xlu1 %2613  ;;  %v2623_v30 = vpop.xlane.xlu0 %2622  ;;  %v2741_v5 = vrot.slane %v2658_v19, %v2740_v15 }
 0x56f   :  { %v2643_v62 = vadd.f32 %v4834_v61, %v2614_v32  ;;  %v2646_v56 = vadd.f32 %v4834_v61, %v2623_v30  ;;  %v2736_v57 = vsel %vm2735_vm6, %v2734_v52, %v2729_v8  ;;  %v2762_v34 = vrot.slane %v2661_v14, %v2761_v45 }
 0x570   :  { %v2743_v48 = vsel %vm2742_vm7, %v2741_v5, %v2736_v57 }
 0x571   :  { %v2659_v26 = vmax.f32 %v2643_v62, 0.0  ;;  %v2662_v23 = vmax.f32 %v2646_v56, 0.0 }
 0x572   :  { %v2629_v3 = vpop.xlane.xlu0 %2628 }
 0x573   :  { %v2748_v37 = vrot.slane %v2659_v26, %v2747_v43  ;;  %v2648_v60 = vadd.f32 %v4834_v61, %v2629_v3  ;;  %v2626_v58 = vpop.xlane.xlu1 %2625  ;;  %v2769_v33 = vrot.slane %v2662_v23, %v2768_v22 }
 0x574   :  { %v2647_v13 = vadd.f32 %v4834_v61, %v2626_v58 }
 0x575   :  { %v2750_v28 = vsel %vm2749_vm8, %v2748_v37, %v2743_v48  ;;  %v2664_v27 = vmax.f32 %v2648_v60, 0.0 }
 0x576   :  { %v2757_v50 = vsel %vm2756_vm9, %v2755_v0, %v2750_v28  ;;  %v2663_v20 = vmax.f32 %v2647_v13, 0.0 }
 0x577   :  { %v2764_v24 = vsel %vm2763_vm10, %v2762_v34, %v2757_v50  ;;  %v2632_v49 = vpop.xlane.xlu1 %2631  ;;  %v2783_v21 = vrot.slane %v2664_v27, %v2782_v35 }
 0x578   :  { %v2776_v29 = vrot.slane %v2663_v20, %v2775_v17  ;;  %v2649_v6 = vadd.f32 %v4834_v61, %v2632_v49  ;;  %v2771_v7 = vsel %vm2770_vm11, %v2769_v33, %v2764_v24 }
 0x57a   :  { %v2665_v44 = vmax.f32 %v2649_v6, 0.0  ;;  %v2778_v18 = vsel %vm2777_vm12, %v2776_v29, %v2771_v7 }
 0x57b   :  { %v2785_v42 = vsel %vm2784_vm13, %v2783_v21, %v2778_v18 }
 0x57c   :  { %v2790_v38 = vrot.slane %v2665_v44, %v2789_v53 }
 0x57e   :  { %v2792_v12 = vsel %vm2791_vm3, %v2790_v38, %v2785_v42 }
 0x57f   :  { %2794 = vst [vmem:[#allocation6] sm:$0x1] %v2792_v12 }
 0x580   :  { %3349 = shalt.err (!%p3346_p9)
}
 0x581   :  { %2804 = dma.vmem_to_hbm [thread:$0]  %s2802_s10, 16, %s4898_s6, [#allocation5]  }
 0x582   :  { %3360 = dma.done.wait [#allocation5], 16  }
 0x583   :  { %3361 = vsyncadd [#allocation5], 4294967280 }
 0x584   :  { %2808 = vsyncpa [#allocation4], 1 }
 0x585   :  { %2809 = vsyncpa [#allocation5], 1 }

</bundles_post_ra>
